<compile_context>
chip_gen: v7x
topology: tpu7x:2x2x1
jax: 0.10.0
libtpu: 0.0.40
codegen_flags: <defaults>
</compile_context>

<pallas_src>
import functools

import jax
import jax.numpy as jnp
from jax.experimental import pallas as pl
from jax.experimental.pallas import tpu as pltpu

LN_EPS = 1e-12  # HF ConvNextConfig.layer_norm_eps default


def _head_kernel(hidden_ref, feat_ref, gamma_ref, beta_ref,
                 w1_ref, w2_ref, b1_ref, wf_ref, bf_ref,
                 out_ref, pool_ref, *, num_chunks, inv_hw):
    """Grid = (batch_tiles, channel_chunks).  hidden_ref: [TB, CC, HW] (bf16/f32).

    Per step: stream-pool this channel chunk over the spatial (lane) axis into
    the scratch accumulator.  On the last channel chunk: LayerNorm pooler +
    pre_layer + GELU + final_layer, write [TB, 1].
    """
    c = pl.program_id(1)

    # --- streamed spatial pooling: partial sums for this channel chunk ---
    chunk = hidden_ref[...].astype(jnp.float32)            # [TB, CC, HW]
    pool_ref[c] = jnp.sum(chunk, axis=-1)                  # [TB, CC]

    @pl.when(c == num_chunks - 1)
    def _():
        # Gather all channel-chunk partial sums (static lane concat) -> mean.
        pooled = jnp.concatenate(
            [pool_ref[k] for k in range(num_chunks)], axis=-1) * inv_hw   # [TB, C]

        # --- ConvNext pooler LayerNorm(C) ---
        mu = jnp.mean(pooled, axis=-1, keepdims=True)
        var = jnp.mean(jnp.square(pooled - mu), axis=-1, keepdims=True)
        feature = (pooled - mu) * jax.lax.rsqrt(var + LN_EPS)
        feature = feature * gamma_ref[...] + beta_ref[...]                # [TB, C]

        # --- pre_layer: Linear(768+2 -> 64). 768-part on the MXU, the K=2
        #     tail as VPU broadcast multiply-adds (avoids a wasted vmatmul). ---
        pre = jnp.dot(feature, w1_ref[...], preferred_element_type=jnp.float32)
        f = feat_ref[...].astype(jnp.float32)                             # [TB, 2]
        pre = (pre
               + f[:, 0:1] * w2_ref[0:1, :]
               + f[:, 1:2] * w2_ref[1:2, :]
               + b1_ref[...])                                             # [TB, 64]

        # --- exact GELU (PyTorch nn.GELU default) ---
        inv_sqrt2 = jnp.float32(0.7071067811865476)
        g = 0.5 * pre * (1.0 + jax.lax.erf(pre * inv_sqrt2))              # [TB, 64]

        # --- final_layer: Linear(64 -> 1) as VPU multiply + lane reduce
        #     (N=1 MXU matmul would waste the array + drain). wf_ref: [1, 64] ---
        out = jnp.sum(g * wf_ref[...], axis=-1, keepdims=True) + bf_ref[...]
        out_ref[...] = out.astype(out_ref.dtype)                          # [TB, 1]


def _pick_tile_b(batch, cc, hw, itemsize, per_buffer_bytes=4 * 1024 * 1024):
    """Biggest batch tile whose (lane-padded) hidden block fits a ~4 MiB buffer.

    Double-buffered that is <= 8 MiB: comfortably inside v5e's 16 MiB scoped
    default and v7x's 64 MiB physical VMEM. Multiple of 8 so the (8,128) block
    rules hold when TB < padded batch.
    """
    lanes = ((hw + 127) // 128) * 128          # VMEM lane padding of the block
    tb = per_buffer_bytes // max(1, cc * lanes * itemsize)
    tb = int(max(8, (tb // 8) * 8))
    tb = min(tb, 128)
    if batch <= tb:
        return batch                           # single tile: block dims == array dims
    return tb


@functools.partial(jax.jit, static_argnames=("cc",))
def net_forward(hidden_nchw, feat, params, cc=256):
    """hidden_nchw: ConvNext last hidden state [B, 768, H, W] (NCHW, bf16 or f32).
    feat: [B, 2] float32.  Returns [B, 1] float32."""
    B, C, H, W = hidden_nchw.shape
    HW = H * W
    if C % cc != 0:
        cc = C
    num_chunks = C // cc
    hid = params["w1"].shape[1]

    # Free reshape only (no transpose, no extra HBM pass): channel stays the
    # sublane axis, spatial becomes the lane axis and is reduced in-kernel.
    hidden = hidden_nchw.reshape(B, C, HW)

    TB = _pick_tile_b(B, cc, HW, hidden.dtype.itemsize)
    Bp = ((B + TB - 1) // TB) * TB
    if Bp != B:  # tail tile: pad batch (outputs for padded rows sliced off below)
        hidden = jnp.pad(hidden, ((0, Bp - B), (0, 0), (0, 0)))
        feat = jnp.pad(feat, ((0, Bp - B), (0, 0)))

    grid = (Bp // TB, num_chunks)

    out = pl.pallas_call(
        functools.partial(_head_kernel, num_chunks=num_chunks, inv_hw=1.0 / float(HW)),
        out_shape=jax.ShapeDtypeStruct((Bp, 1), jnp.float32),
        grid_spec=pltpu.PrefetchScalarGridSpec(
            num_scalar_prefetch=0,
            grid=grid,
            in_specs=[
                # hidden: tiled over (batch tile, channel chunk); spatial whole.
                pl.BlockSpec((TB, cc, HW), lambda i, c: (i, c, 0)),
                pl.BlockSpec((TB, 2), lambda i, c: (i, 0)),
                # weights: constant index maps -> stay VMEM-resident.
                pl.BlockSpec((1, C), lambda i, c: (0, 0)),      # ln_gamma
                pl.BlockSpec((1, C), lambda i, c: (0, 0)),      # ln_beta
                pl.BlockSpec((C, hid), lambda i, c: (0, 0)),    # w1
                pl.BlockSpec((2, hid), lambda i, c: (0, 0)),    # w2
                pl.BlockSpec((1, hid), lambda i, c: (0, 0)),    # b1
                pl.BlockSpec((1, hid), lambda i, c: (0, 0)),    # wf (transposed final weight)
                pl.BlockSpec((1, 1), lambda i, c: (0, 0)),      # bf
            ],
            out_specs=pl.BlockSpec((TB, 1), lambda i, c: (i, 0)),
            scratch_shapes=[pltpu.VMEM((num_chunks, TB, cc), jnp.float32)],
        ),
        compiler_params=pltpu.CompilerParams(
            dimension_semantics=("parallel", "arbitrary"),
            vmem_limit_bytes=32 * 1024 * 1024,
        ),
    )(hidden, feat,
      params["ln_gamma"], params["ln_beta"],
      params["w1"], params["w2"], params["b1"],
      params["wf"], params["bf"])

    return out[:B]


def init_params(key, c=768, hid=64):
    ks = jax.random.split(key, 6)
    scale_pre = 1.0 / jnp.sqrt(jnp.float32(c + 2))
    scale_fin = 1.0 / jnp.sqrt(jnp.float32(hid))
    return {
        # pooler LayerNorm(768)
        "ln_gamma": jnp.ones((1, c), jnp.float32),
        "ln_beta": jnp.zeros((1, c), jnp.float32),
        # pre_layer Linear(770 -> 64), split: w1 = weight[:, :768].T, w2 = weight[:, 768:].T
        "w1": jax.random.uniform(ks[0], (c, hid), jnp.float32, -1.0, 1.0) * scale_pre,
        "w2": jax.random.uniform(ks[1], (2, hid), jnp.float32, -1.0, 1.0) * scale_pre,
        "b1": jax.random.uniform(ks[2], (1, hid), jnp.float32, -1.0, 1.0) * scale_pre,
        # final_layer Linear(64 -> 1): stored as (1, 64) row (PyTorch weight layout)
        "wf": jax.random.uniform(ks[3], (1, hid), jnp.float32, -1.0, 1.0) * scale_fin,
        "bf": jax.random.uniform(ks[4], (1, 1), jnp.float32, -1.0, 1.0) * scale_fin,
    }


def _ref_forward(x_nchw, feat, params):
    """Pure-JAX reference for a sanity check (same bf16 input, f32 math)."""
    x = x_nchw.astype(jnp.float32)
    pooled = jnp.mean(x, axis=(2, 3))                               # [B, C]
    mu = jnp.mean(pooled, axis=-1, keepdims=True)
    var = jnp.mean((pooled - mu) ** 2, axis=-1, keepdims=True)
    feature = (pooled - mu) / jnp.sqrt(var + LN_EPS) * params["ln_gamma"] + params["ln_beta"]
    pre = feature @ params["w1"] + feat @ params["w2"] + params["b1"]
    g = 0.5 * pre * (1.0 + jax.lax.erf(pre / jnp.sqrt(2.0)))
    return jnp.sum(g * params["wf"], axis=-1, keepdims=True) + params["bf"]


if __name__ == "__main__":
    key = jax.random.PRNGKey(0)
    k_x, k_f, k_p = jax.random.split(key, 3)

    # ConvNext-tiny-consistent head shapes: final hidden state [B, 768, 7, 7].
    B, C, H, W = 2, 768, 7, 7
    # Backbone hidden state supplied in bf16 (halves the dominant HBM DMA).
    x = jax.random.normal(k_x, (B, C, H, W), jnp.float32).astype(jnp.bfloat16)
    feat = jax.random.normal(k_f, (B, 2), jnp.float32)
    params = init_params(k_p, c=C, hid=64)

    out = jax.block_until_ready(net_forward(x, feat, params))
    ref = _ref_forward(x, feat, params)

    assert out.shape == (B, 1), out.shape
    assert jnp.allclose(out, ref, atol=2e-3, rtol=2e-3), (out, ref)
    print("KERNEL_OK")
</pallas_src>

<mosaic_0001>
module attributes {stable_mosaic.version = 11 : i64} {
  func.func @_head_kernel(%arg0: i32, %arg1: i32, %arg2: memref<2x256x49xbf16, #tpu.memory_space<vmem>>, %arg3: memref<2x2xf32, #tpu.memory_space<vmem>>, %arg4: memref<1x768xf32, #tpu.memory_space<vmem>>, %arg5: memref<1x768xf32, #tpu.memory_space<vmem>>, %arg6: memref<768x64xf32, #tpu.memory_space<vmem>>, %arg7: memref<2x64xf32, #tpu.memory_space<vmem>>, %arg8: memref<1x64xf32, #tpu.memory_space<vmem>>, %arg9: memref<1x64xf32, #tpu.memory_space<vmem>>, %arg10: memref<1x1xf32, #tpu.memory_space<vmem>>, %arg11: memref<2x1xf32, #tpu.memory_space<vmem>>, %arg12: memref<3x2x256xf32, #tpu.memory_space<vmem>>) attributes {dimension_semantics = [#tpu.dimension_semantics<parallel>, #tpu.dimension_semantics<arbitrary>], iteration_bounds = array<i64: 1, 3>, scalar_prefetch = 0 : i64, scratch_operands = 1 : i64, tpu.core_type = #tpu.core_type<tc>, window_params = [{transform_indices = @transform_0, window_bounds = array<i64: 2, 256, 49>}, {transform_indices = @transform_1, window_bounds = array<i64: 2, 2>}, {pipeline_mode = #tpu.pipeline_mode<synchronous>, transform_indices = @transform_2, window_bounds = array<i64: 1, 768>}, {pipeline_mode = #tpu.pipeline_mode<synchronous>, transform_indices = @transform_3, window_bounds = array<i64: 1, 768>}, {pipeline_mode = #tpu.pipeline_mode<synchronous>, transform_indices = @transform_4, window_bounds = array<i64: 768, 64>}, {pipeline_mode = #tpu.pipeline_mode<synchronous>, transform_indices = @transform_5, window_bounds = array<i64: 2, 64>}, {pipeline_mode = #tpu.pipeline_mode<synchronous>, transform_indices = @transform_6, window_bounds = array<i64: 1, 64>}, {pipeline_mode = #tpu.pipeline_mode<synchronous>, transform_indices = @transform_7, window_bounds = array<i64: 1, 64>}, {pipeline_mode = #tpu.pipeline_mode<synchronous>, transform_indices = @transform_8, window_bounds = array<i64: 1, 1>}, {transform_indices = @transform_9, window_bounds = array<i64: 2, 1>}]} {
    %c0 = arith.constant 0 : index
    %c0_0 = arith.constant 0 : index
    %c0_1 = arith.constant 0 : index
    %0 = vector.load %arg2[%c0, %c0_0, %c0_1] : memref<2x256x49xbf16, #tpu.memory_space<vmem>>, vector<2x256x49xbf16>
    %1 = arith.extf %0 : vector<2x256x49xbf16> to vector<2x256x49xf32>
    %cst = arith.constant dense<0.000000e+00> : vector<2x256xf32>
    %2 = vector.multi_reduction <add>, %1, %cst [2] : vector<2x256x49xf32> to vector<2x256xf32>
    %3 = arith.index_cast %arg1 : i32 to index
    %c0_2 = arith.constant 0 : index
    %c0_3 = arith.constant 0 : index
    %4 = vector.load %arg12[%3, %c0_2, %c0_3] : memref<3x2x256xf32, #tpu.memory_space<vmem>>, vector<1x2x256xf32>
    %5 = vector.shape_cast %4 : vector<1x2x256xf32> to vector<2x256xf32>
    %6 = vector.shape_cast %2 : vector<2x256xf32> to vector<1x2x256xf32>
    tpu.vector_store %arg12[%3, %c0_2, %c0_3], %6 {strides = array<i32>} : memref<3x2x256xf32, #tpu.memory_space<vmem>>, vector<1x2x256xf32>,
    %c2_i32 = arith.constant 2 : i32
    %7 = arith.cmpi eq, %arg1, %c2_i32 : i32
    %8 = arith.extui %7 : i1 to i32
    %c0_i32 = arith.constant 0 : i32
    %9 = arith.cmpi ne, %8, %c0_i32 : i32
    scf.if %9 {
      %c0_4 = arith.constant 0 : index
      %c0_5 = arith.constant 0 : index
      %c0_6 = arith.constant 0 : index
      %10 = vector.load %arg12[%c0_4, %c0_5, %c0_6] : memref<3x2x256xf32, #tpu.memory_space<vmem>>, vector<1x2x256xf32>
      %11 = vector.shape_cast %10 : vector<1x2x256xf32> to vector<2x256xf32>
      %c1 = arith.constant 1 : index
      %c0_7 = arith.constant 0 : index
      %c0_8 = arith.constant 0 : index
      %12 = vector.load %arg12[%c1, %c0_7, %c0_8] : memref<3x2x256xf32, #tpu.memory_space<vmem>>, vector<1x2x256xf32>
      %13 = vector.shape_cast %12 : vector<1x2x256xf32> to vector<2x256xf32>
      %c2 = arith.constant 2 : index
      %c0_9 = arith.constant 0 : index
      %c0_10 = arith.constant 0 : index
      %14 = vector.load %arg12[%c2, %c0_9, %c0_10] : memref<3x2x256xf32, #tpu.memory_space<vmem>>, vector<1x2x256xf32>
      %15 = vector.shape_cast %14 : vector<1x2x256xf32> to vector<2x256xf32>
      %16 = tpu.concatenate %11, %13, %15 in 1 : vector<2x256xf32>, vector<2x256xf32>, vector<2x256xf32> -> vector<2x768xf32>
      %cst_11 = arith.constant 0.0204081628 : f32
      %17 = vector.broadcast %cst_11 : f32 to vector<2x768xf32>
      %18 = arith.mulf %16, %17 : vector<2x768xf32>
      %cst_12 = arith.constant dense<0.000000e+00> : vector<2xf32>
      %19 = vector.multi_reduction <add>, %18, %cst_12 [1] : vector<2x768xf32> to vector<2xf32>
      %20 = vector.shape_cast %19 : vector<2xf32> to vector<2x1xf32>
      %cst_13 = arith.constant 7.680000e+02 : f32
      %21 = vector.broadcast %cst_13 : f32 to vector<2x1xf32>
      %22 = arith.divf %20, %21 : vector<2x1xf32>
      %23 = vector.broadcast %22 : vector<2x1xf32> to vector<2x768xf32>
      %24 = arith.subf %18, %23 : vector<2x768xf32>
      %25 = arith.mulf %24, %24 : vector<2x768xf32>
      %cst_14 = arith.constant dense<0.000000e+00> : vector<2xf32>
      %26 = vector.multi_reduction <add>, %25, %cst_14 [1] : vector<2x768xf32> to vector<2xf32>
      %27 = vector.shape_cast %26 : vector<2xf32> to vector<2x1xf32>
      %cst_15 = arith.constant 7.680000e+02 : f32
      %28 = vector.broadcast %cst_15 : f32 to vector<2x1xf32>
      %29 = arith.divf %27, %28 : vector<2x1xf32>
      %30 = vector.broadcast %22 : vector<2x1xf32> to vector<2x768xf32>
      %31 = arith.subf %18, %30 : vector<2x768xf32>
      %cst_16 = arith.constant 9.99999996E-13 : f32
      %32 = vector.broadcast %cst_16 : f32 to vector<2x1xf32>
      %33 = arith.addf %29, %32 : vector<2x1xf32>
      %34 = math.rsqrt %33 : vector<2x1xf32>
      %35 = vector.broadcast %34 : vector<2x1xf32> to vector<2x768xf32>
      %36 = arith.mulf %31, %35 : vector<2x768xf32>
      %c0_17 = arith.constant 0 : index
      %c0_18 = arith.constant 0 : index
      %37 = vector.load %arg4[%c0_17, %c0_18] : memref<1x768xf32, #tpu.memory_space<vmem>>, vector<1x768xf32>
      %38 = vector.broadcast %37 : vector<1x768xf32> to vector<2x768xf32>
      %39 = arith.mulf %36, %38 : vector<2x768xf32>
      %c0_19 = arith.constant 0 : index
      %c0_20 = arith.constant 0 : index
      %40 = vector.load %arg5[%c0_19, %c0_20] : memref<1x768xf32, #tpu.memory_space<vmem>>, vector<1x768xf32>
      %41 = vector.broadcast %40 : vector<1x768xf32> to vector<2x768xf32>
      %42 = arith.addf %39, %41 : vector<2x768xf32>
      %c0_21 = arith.constant 0 : index
      %c0_22 = arith.constant 0 : index
      %43 = vector.load %arg6[%c0_21, %c0_22] : memref<768x64xf32, #tpu.memory_space<vmem>>, vector<768x64xf32>
      %cst_23 = arith.constant dense<0.000000e+00> : vector<2x64xf32>
      %44 = tpu.matmul %42, %43, %cst_23 {dimension_numbers = #tpu.dot_dimension_numbers<[1], [0], [0], [1], [0, 0, 1, 1], [], []>} : vector<2x768xf32>, vector<768x64xf32>, vector<2x64xf32> -> vector<2x64xf32>
      %c0_24 = arith.constant 0 : index
      %c0_25 = arith.constant 0 : index
      %45 = vector.load %arg3[%c0_24, %c0_25] : memref<2x2xf32, #tpu.memory_space<vmem>>, vector<2x2xf32>
      %46 = vector.extract_strided_slice %45 {offsets = [0, 0], sizes = [2, 1], strides = [1, 1]} : vector<2x2xf32> to vector<2x1xf32>
      %c0_26 = arith.constant 0 : index
      %c0_27 = arith.constant 0 : index
      %47 = vector.load %arg7[%c0_26, %c0_27] : memref<2x64xf32, #tpu.memory_space<vmem>>, vector<1x64xf32>
      %48 = vector.broadcast %46 : vector<2x1xf32> to vector<2x64xf32>
      %49 = vector.broadcast %47 : vector<1x64xf32> to vector<2x64xf32>
      %50 = arith.mulf %48, %49 : vector<2x64xf32>
      %51 = arith.addf %44, %50 : vector<2x64xf32>
      %52 = vector.extract_strided_slice %45 {offsets = [0, 1], sizes = [2, 1], strides = [1, 1]} : vector<2x2xf32> to vector<2x1xf32>
      %c1_28 = arith.constant 1 : index
      %c0_29 = arith.constant 0 : index
      %53 = vector.load %arg7[%c1_28, %c0_29] : memref<2x64xf32, #tpu.memory_space<vmem>>, vector<1x64xf32>
      %54 = vector.broadcast %52 : vector<2x1xf32> to vector<2x64xf32>
      %55 = vector.broadcast %53 : vector<1x64xf32> to vector<2x64xf32>
      %56 = arith.mulf %54, %55 : vector<2x64xf32>
      %57 = arith.addf %51, %56 : vector<2x64xf32>
      %c0_30 = arith.constant 0 : index
      %c0_31 = arith.constant 0 : index
      %58 = vector.load %arg8[%c0_30, %c0_31] : memref<1x64xf32, #tpu.memory_space<vmem>>, vector<1x64xf32>
      %59 = vector.broadcast %58 : vector<1x64xf32> to vector<2x64xf32>
      %60 = arith.addf %57, %59 : vector<2x64xf32>
      %cst_32 = arith.constant 5.000000e-01 : f32
      %61 = vector.broadcast %cst_32 : f32 to vector<2x64xf32>
      %62 = arith.mulf %61, %60 : vector<2x64xf32>
      %cst_33 = arith.constant 0.707106769 : f32
      %63 = vector.broadcast %cst_33 : f32 to vector<2x64xf32>
      %64 = arith.mulf %60, %63 : vector<2x64xf32>
      %65 = math.erf %64 : vector<2x64xf32>
      %cst_34 = arith.constant 1.000000e+00 : f32
      %66 = vector.broadcast %cst_34 : f32 to vector<2x64xf32>
      %67 = arith.addf %66, %65 : vector<2x64xf32>
      %68 = arith.mulf %62, %67 : vector<2x64xf32>
      %c0_35 = arith.constant 0 : index
      %c0_36 = arith.constant 0 : index
      %69 = vector.load %arg9[%c0_35, %c0_36] : memref<1x64xf32, #tpu.memory_space<vmem>>, vector<1x64xf32>
      %70 = vector.broadcast %69 : vector<1x64xf32> to vector<2x64xf32>
      %71 = arith.mulf %68, %70 : vector<2x64xf32>
      %cst_37 = arith.constant dense<0.000000e+00> : vector<2xf32>
      %72 = vector.multi_reduction <add>, %71, %cst_37 [1] : vector<2x64xf32> to vector<2xf32>
      %73 = vector.shape_cast %72 : vector<2xf32> to vector<2x1xf32>
      %c0_38 = arith.constant 0 : index
      %c0_39 = arith.constant 0 : index
      %74 = vector.load %arg10[%c0_38, %c0_39] : memref<1x1xf32, #tpu.memory_space<vmem>>, vector<1x1xf32>
      %75 = vector.broadcast %74 : vector<1x1xf32> to vector<2x1xf32>
      %76 = arith.addf %73, %75 : vector<2x1xf32>
      %c0_40 = arith.constant 0 : index
      %c0_41 = arith.constant 0 : index
      %77 = vector.load %arg11[%c0_40, %c0_41] : memref<2x1xf32, #tpu.memory_space<vmem>>, vector<2x1xf32>
      tpu.vector_store %arg11[%c0_40, %c0_41], %76 {strides = array<i32>} : memref<2x1xf32, #tpu.memory_space<vmem>>, vector<2x1xf32>,
    } else {
    }
    return
  }
  func.func @transform_0(%arg0: i32, %arg1: i32) -> (i32, i32, i32) {
    %c0_i32 = arith.constant 0 : i32
    %c0_i32_0 = arith.constant 0 : i32
    return %arg0, %arg1, %c0_i32 : i32, i32, i32
  }
  func.func @transform_1(%arg0: i32, %arg1: i32) -> (i32, i32) {
    %c0_i32 = arith.constant 0 : i32
    %c0_i32_0 = arith.constant 0 : i32
    return %arg0, %c0_i32 : i32, i32
  }
  func.func @transform_2(%arg0: i32, %arg1: i32) -> (i32, i32) {
    %c0_i32 = arith.constant 0 : i32
    %c0_i32_0 = arith.constant 0 : i32
    %c0_i32_1 = arith.constant 0 : i32
    return %c0_i32, %c0_i32_0 : i32, i32
  }
  func.func @transform_3(%arg0: i32, %arg1: i32) -> (i32, i32) {
    %c0_i32 = arith.constant 0 : i32
    %c0_i32_0 = arith.constant 0 : i32
    %c0_i32_1 = arith.constant 0 : i32
    return %c0_i32, %c0_i32_0 : i32, i32
  }
  func.func @transform_4(%arg0: i32, %arg1: i32) -> (i32, i32) {
    %c0_i32 = arith.constant 0 : i32
    %c0_i32_0 = arith.constant 0 : i32
    %c0_i32_1 = arith.constant 0 : i32
    return %c0_i32, %c0_i32_0 : i32, i32
  }
  func.func @transform_5(%arg0: i32, %arg1: i32) -> (i32, i32) {
    %c0_i32 = arith.constant 0 : i32
    %c0_i32_0 = arith.constant 0 : i32
    %c0_i32_1 = arith.constant 0 : i32
    return %c0_i32, %c0_i32_0 : i32, i32
  }
  func.func @transform_6(%arg0: i32, %arg1: i32) -> (i32, i32) {
    %c0_i32 = arith.constant 0 : i32
    %c0_i32_0 = arith.constant 0 : i32
    %c0_i32_1 = arith.constant 0 : i32
    return %c0_i32, %c0_i32_0 : i32, i32
  }
  func.func @transform_7(%arg0: i32, %arg1: i32) -> (i32, i32) {
    %c0_i32 = arith.constant 0 : i32
    %c0_i32_0 = arith.constant 0 : i32
    %c0_i32_1 = arith.constant 0 : i32
    return %c0_i32, %c0_i32_0 : i32, i32
  }
  func.func @transform_8(%arg0: i32, %arg1: i32) -> (i32, i32) {
    %c0_i32 = arith.constant 0 : i32
    %c0_i32_0 = arith.constant 0 : i32
    %c0_i32_1 = arith.constant 0 : i32
    return %c0_i32, %c0_i32_0 : i32, i32
  }
  func.func @transform_9(%arg0: i32, %arg1: i32) -> (i32, i32) {
    %c0_i32 = arith.constant 0 : i32
    %c0_i32_0 = arith.constant 0 : i32
    return %arg0, %c0_i32 : i32, i32
  }
}

</mosaic_0001>

<bundles_post_ra>
// kernel: net_forward.1
= control target key start
LH: loop header
LB: loop body
LE: loop exit
PB: predicated region body
PF: predicated region fallthrough
CT: control target
= control target key end

     0   :  { %s7345_s0 = inlined_call_operand.vmem [shape: bf16[2,768,49], index: 0, kind: input, shape index: {}]   ;;  %s7346_s1 = inlined_call_operand.vmem [shape: f32[2,2], index: 1, kind: input, shape index: {}]   ;;  %s7347_s2 = inlined_call_operand.vmem [shape: f32[1,768], index: 2, kind: input, shape index: {}]   ;;  %s7348_s3 = inlined_call_operand.vmem [shape: f32[1,768], index: 3, kind: input, shape index: {}]   ;;  %s7349_s4 = inlined_call_operand.vmem [shape: f32[768,64], index: 4, kind: input, shape index: {}]   ;;  %s7350_s5 = inlined_call_operand.vmem [shape: f32[2,64], index: 5, kind: input, shape index: {}]   ;;  %s7351_s6 = inlined_call_operand.vmem [shape: f32[1,64], index: 6, kind: input, shape index: {}]   ;;  %s7352_s7 = inlined_call_operand.vmem [shape: f32[1,64], index: 7, kind: input, shape index: {}]   ;;  %s7353_s8 = inlined_call_operand.<no memory space> [shape: f32[1,1], index: 8, kind: input, shape index: {}]   ;;  %s7354_s9 = inlined_call_operand.vmem [shape: f32[2,1], index: 9, kind: output, shape index: {}]  }
   0x1   :  { %v14_v0 = vstv %s7353_s8 }
   0x2   :  { %15 = vst [vmem:[#allocation3] sm:$0x1] %v14_v0 }
   0x3   :  { %s5651_s11 = smov 0   ;;  %s5653_s12 = smov 0  }
   0x4   :  { %s5655_s13 = smov 0   ;;  %s5657_s14 = smov 0  }
   0x5   :  { %s5659_s15 = smov 0  }
   0x6 LB: > { %s30_s8 = sadd.s32 1, %s5584_s14  ;;  %p49_p1 = scmp.ne.s32.totalorder %s5576_s12, %s5572_s11  ;;  %s5588_s15 = sphi %s5659_s15, %s21_s15   ;;  %s5584_s14 = sphi %s5657_s14, %s7358_s14   ;;  %s5580_s13 = sphi %s5655_s13, %s7357_s13   ;;  %s5576_s12 = sphi %s5653_s12, %s7356_s12   ;;  %s5572_s11 = sphi %s5651_s11, %s7355_s11  }
   0x7   : > { %p31_p0 = scmp.ge.s32.totalorder %s30_s8, 3  ;;  %p50_p2 = scmp.eq.s32.totalorder %s5588_s15, 0 }
   0x8   : > { %s42_s17 = sadd.s32 1, %s5576_s12  ;;  %p5110_p5 = scmp.ge.s32.totalorder %s5588_s15, 3 }
   0x9   : > { %s7360_s8 = smov (%p31_p0, %s30_s8), 0  ;;  %p51_p3 = por %p50_p2, %p49_p1 }
   0xa   : > { %s38_s16 = ssub.s32 %s5584_s14, %s7360_s8  ;;  %302 = sbr.rel (%p5110_p5) target bundleno = 37 (0x25), region = 48 }
   0xb   : > { %p40_p4 = scmp.eq.s32.totalorder %s38_s16, 0 }
   0xd   : > { %s5686_s18 = scalar_select %p40_p4, %s5576_s12, %s42_s17  }
  0x11   : > { %305 = sbr.rel (!%p51_p3) target bundleno = 37 (0x25), region = 52  ;;  %s307_s19 = sand.u32 (%p51_p3), 1, %s5576_s12  }
  0x12   : > { %s5131_s20 = sshll.u32 (%p51_p3), %s5584_s14, 7  ;;  %s5111_s21 = sshll.u32 (%p51_p3), %s307_s19, 8 }
  0x13   : > { %s5694_s24 = scalar_lea.vmem (%p51_p3), %s7345_s0, %s5131_s20  ;;  %s5699_s25 = scalar_lea.vmem (%p51_p3), [#allocation4], %s5111_s21 }
  0x14   : > { %v331_v1 = vld [vmem:[%s5694_s24] sm:$0xff] (%p51_p3)   ;;  %v335_v2 = vld [vmem:[%s5694_s24 + $0x8] sm:$0xff] (%p51_p3)   ;;  %v339_v3 = vld [vmem:[%s5694_s24 + $0x10] sm:$0xff] (%p51_p3)  }
  0x15   : > { %332 = vst [vmem:[%s5699_s25] sm:$0xff] (%p51_p3), %v331_v1   ;;  %336 = vst [vmem:[%s5699_s25 + $0x8] sm:$0xff] (%p51_p3), %v335_v2   ;;  %v343_v4 = vld [vmem:[%s5694_s24 + $0x18] sm:$0xff] (%p51_p3)   ;;  %v347_v5 = vld [vmem:[%s5694_s24 + $0x20] sm:$0xff] (%p51_p3)  }
  0x16   : > { %340 = vst [vmem:[%s5699_s25 + $0x10] sm:$0xff] (%p51_p3), %v339_v3   ;;  %v351_v6 = vld [vmem:[%s5694_s24 + $0x28] sm:$0xff] (%p51_p3)   ;;  %344 = vst [vmem:[%s5699_s25 + $0x18] sm:$0xff] (%p51_p3), %v343_v4   ;;  %v355_v7 = vld [vmem:[%s5694_s24 + $0x30] sm:$0xff] (%p51_p3)  }
  0x17   : > { %348 = vst [vmem:[%s5699_s25 + $0x20] sm:$0xff] (%p51_p3), %v347_v5   ;;  %352 = vst [vmem:[%s5699_s25 + $0x28] sm:$0xff] (%p51_p3), %v351_v6   ;;  %v359_v8 = vld [vmem:[%s5694_s24 + $0x38] sm:$0xff] (%p51_p3)   ;;  %v363_v9 = vld [vmem:[%s5694_s24 + $0x40] sm:$0xff] (%p51_p3)  }
  0x18   : > { %356 = vst [vmem:[%s5699_s25 + $0x30] sm:$0xff] %v355_v7   ;;  %360 = vst [vmem:[%s5699_s25 + $0x38] sm:$0xff] %v359_v8   ;;  %v367_v10 = vld [vmem:[%s5694_s24 + $0x48] sm:$0xff]   ;;  %v371_v11 = vld [vmem:[%s5694_s24 + $0x50] sm:$0xff]  }
  0x19   : > { %364 = vst [vmem:[%s5699_s25 + $0x40] sm:$0xff] %v363_v9   ;;  %v375_v12 = vld [vmem:[%s5694_s24 + $0x58] sm:$0xff]   ;;  %368 = vst [vmem:[%s5699_s25 + $0x48] sm:$0xff] %v367_v10   ;;  %v379_v13 = vld [vmem:[%s5694_s24 + $0x60] sm:$0xff]  }
  0x1a   : > { %372 = vst [vmem:[%s5699_s25 + $0x50] sm:$0xff] %v371_v11   ;;  %376 = vst [vmem:[%s5699_s25 + $0x58] sm:$0xff] %v375_v12   ;;  %v383_v14 = vld [vmem:[%s5694_s24 + $0x68] sm:$0xff]   ;;  %v387_v15 = vld [vmem:[%s5694_s24 + $0x70] sm:$0xff]  }
  0x1b   : > { %380 = vst [vmem:[%s5699_s25 + $0x60] sm:$0xff] %v379_v13   ;;  %384 = vst [vmem:[%s5699_s25 + $0x68] sm:$0xff] %v383_v14   ;;  %v391_v16 = vld [vmem:[%s5694_s24 + $0x78] sm:$0xff]   ;;  %v395_v17 = vld [vmem:[%s5694_s24 + $0x180] sm:$0xff]  }
  0x1c   : > { %388 = vst [vmem:[%s5699_s25 + $0x70] sm:$0xff] %v387_v15   ;;  %v399_v18 = vld [vmem:[%s5694_s24 + $0x188] sm:$0xff]   ;;  %392 = vst [vmem:[%s5699_s25 + $0x78] sm:$0xff] %v391_v16   ;;  %v403_v19 = vld [vmem:[%s5694_s24 + $0x190] sm:$0xff]  }
  0x1d   : > { %396 = vst [vmem:[%s5699_s25 + $0x80] sm:$0xff] %v395_v17   ;;  %400 = vst [vmem:[%s5699_s25 + $0x88] sm:$0xff] %v399_v18   ;;  %v407_v20 = vld [vmem:[%s5694_s24 + $0x198] sm:$0xff]   ;;  %v411_v21 = vld [vmem:[%s5694_s24 + $0x1a0] sm:$0xff]  }
  0x1e   : > { %404 = vst [vmem:[%s5699_s25 + $0x90] sm:$0xff] %v403_v19   ;;  %408 = vst [vmem:[%s5699_s25 + $0x98] sm:$0xff] %v407_v20   ;;  %v415_v22 = vld [vmem:[%s5694_s24 + $0x1a8] sm:$0xff]   ;;  %v419_v23 = vld [vmem:[%s5694_s24 + $0x1b0] sm:$0xff]  }
  0x1f   : > { %412 = vst [vmem:[%s5699_s25 + $0xa0] sm:$0xff] %v411_v21   ;;  %v423_v24 = vld [vmem:[%s5694_s24 + $0x1b8] sm:$0xff]   ;;  %416 = vst [vmem:[%s5699_s25 + $0xa8] sm:$0xff] %v415_v22   ;;  %v427_v25 = vld [vmem:[%s5694_s24 + $0x1c0] sm:$0xff]  }
  0x20   : > { %420 = vst [vmem:[%s5699_s25 + $0xb0] sm:$0xff] %v419_v23   ;;  %424 = vst [vmem:[%s5699_s25 + $0xb8] sm:$0xff] %v423_v24   ;;  %v431_v26 = vld [vmem:[%s5694_s24 + $0x1c8] sm:$0xff]   ;;  %v435_v27 = vld [vmem:[%s5694_s24 + $0x1d0] sm:$0xff]  }
  0x21   : > { %428 = vst [vmem:[%s5699_s25 + $0xc0] sm:$0xff] %v427_v25   ;;  %432 = vst [vmem:[%s5699_s25 + $0xc8] sm:$0xff] %v431_v26   ;;  %v439_v28 = vld [vmem:[%s5694_s24 + $0x1d8] sm:$0xff]   ;;  %v443_v29 = vld [vmem:[%s5694_s24 + $0x1e0] sm:$0xff]  }
  0x22   : > { %436 = vst [vmem:[%s5699_s25 + $0xd0] sm:$0xff] %v435_v27   ;;  %v447_v30 = vld [vmem:[%s5694_s24 + $0x1e8] sm:$0xff]   ;;  %440 = vst [vmem:[%s5699_s25 + $0xd8] sm:$0xff] %v439_v28   ;;  %v451_v31 = vld [vmem:[%s5694_s24 + $0x1f0] sm:$0xff]  }
  0x23   : > { %444 = vst [vmem:[%s5699_s25 + $0xe0] sm:$0xff] %v443_v29   ;;  %448 = vst [vmem:[%s5699_s25 + $0xe8] sm:$0xff] %v447_v30   ;;  %v455_v32 = vld [vmem:[%s5694_s24 + $0x1f8] sm:$0xff]  }
  0x24   : > { %452 = vst [vmem:[%s5699_s25 + $0xf0] sm:$0xff] %v451_v31   ;;  %456 = vst [vmem:[%s5699_s25 + $0xf8] sm:$0xff] %v455_v32  }
  0x25 PF: > { %p5114_p6 = scmp.ge.s32.totalorder %s5588_s15, 1  ;;  %p608_p7 = scmp.lt.s32.totalorder %s5588_s15, 4 }
  0x27   : > { %p609_p8 = pnand %p5114_p6, %p608_p7 }
  0x28   : > { %s615_s26 = sand.u32 (!%p609_p8), 1, %s5572_s11   ;;  %vm791_vm0 = vcmask (!%p609_p8), 400384   ;;  %vm4131_vm1 = vcmask (!%p609_p8), 130112   ;;  %vm4138_vm2 = vcmask (!%p609_p8), 195712   ;;  %vm4145_vm3 = vcmask (!%p609_p8), 261312   ;;  %s5132_s29 = sshll.u32 (!%p609_p8), %s5580_s13, 2 }
  0x29   : > { %612 = sbr.rel (%p609_p8) target bundleno = 1247 (0x4df), region = 93  ;;  %s5115_s27 = sshll.u32 (!%p609_p8), %s615_s26, 8  ;;  %vm4152_vm4 = vcmask (!%p609_p8), 326912   ;;  %vm4159_vm5 = vcmask (!%p609_p8), 392512   ;;  %vm4166_vm6 = vcmask (!%p609_p8), 458112   ;;  %vm4173_vm7 = vcmask (!%p609_p8), 523712  }
  0x2a   : > { %s5765_s28 = scalar_lea.vmem (!%p609_p8), [#allocation4], %s5115_s27  ;;  %vm4180_vm8 = vcmask (!%p609_p8), 589312   ;;  %vm4187_vm9 = vcmask (!%p609_p8), 654912   ;;  %vm4194_vm10 = vcmask (!%p609_p8), 720512   ;;  %vm4201_vm11 = vcmask (!%p609_p8), 786112   ;;  %s4482_s30 = scalar_lea.vmem (!%p609_p8), [#allocation2], %s5132_s29 }
  0x2b   : > { %v5261_v33 = vld [vmem:[%s5765_s28 + $0x8] sm:$0xff] (!%p609_p8)   ;;  %v5134_v34 = vld [vmem:[%s5765_s28] sm:$0xff] (!%p609_p8)   ;;  %v5262_v39 = vld [vmem:[%s5765_s28 + $0x10] sm:$0xff] (!%p609_p8)   ;;  %vm4208_vm12 = vcmask (!%p609_p8), 851712   ;;  %vm4215_vm13 = vcmask (!%p609_p8), 917312   ;;  %vm4222_vm14 = vcmask (!%p609_p8), 982912  }
  0x2c   : > { %v5139_v35 = vunpack.c.l.bf16 (!%p609_p8), %v5261_v33  ;;  %v5135_v36 = vunpack.c.l.bf16 (!%p609_p8), %v5134_v34  ;;  %v5140_v37 = vunpack.c.h.bf16 (!%p609_p8), %v5261_v33  ;;  %v5136_v38 = vunpack.c.h.bf16 (!%p609_p8), %v5134_v34  ;;  %v5263_v46 = vld [vmem:[%s5765_s28 + $0x18] sm:$0xff] (!%p609_p8)   ;;  %v5264_v47 = vld [vmem:[%s5765_s28 + $0x20] sm:$0xff] (!%p609_p8)   ;;  %v5265_v48 = vld [vmem:[%s5765_s28 + $0x28] sm:$0xff] (!%p609_p8)   ;;  %p5119_p9 = scmp.ne.s32.totalorder (!%p609_p8), %s5580_s13, 2 }
  0x2d   : > { %v5144_v44 = vunpack.c.h.bf16 (!%p609_p8), %v5262_v39  ;;  %v5143_v45 = vunpack.c.l.bf16 (!%p609_p8), %v5262_v39  ;;  %v5266_v49 = vld [vmem:[%s5765_s28 + $0x30] sm:$0xff] (!%p609_p8)   ;;  %v5148_v52 = vunpack.c.h.bf16 (!%p609_p8), %v5263_v46  ;;  %v5147_v53 = vunpack.c.l.bf16 (!%p609_p8), %v5263_v46  ;;  %v5267_v54 = vld [vmem:[%s5765_s28 + $0x38] sm:$0xff] (!%p609_p8)   ;;  %v5784_v1 = vld [vmem:[%s5765_s28 + $0x40] sm:$0xff] (!%p609_p8)  }
  0x2e   : > { %v798_v40 = vsel (!%p609_p8), %vm791_vm0, %v5139_v35, 0.0  ;;  %v792_v41 = vsel (!%p609_p8), %vm791_vm0, %v5135_v36, 0.0  ;;  %v801_v42 = vsel (!%p609_p8), %vm791_vm0, %v5140_v37, 0.0  ;;  %v795_v43 = vsel (!%p609_p8), %vm791_vm0, %v5136_v38, 0.0  ;;  %v5276_v4 = vld [vmem:[%s5765_s28 + $0x80] sm:$0xff] (!%p609_p8)   ;;  %v5277_v5 = vld [vmem:[%s5765_s28 + $0x88] sm:$0xff] (!%p609_p8)  }
  0x2f   : > { %799 = vadd.xlane.f32.xlu1 (!%p609_p8), %v798_v40  ;;  %793 = vadd.xlane.f32.xlu0 (!%p609_p8), %v792_v41  ;;  %v807_v50 = vsel (!%p609_p8), %vm791_vm0, %v5144_v44, 0.0  ;;  %v804_v51 = vsel (!%p609_p8), %vm791_vm0, %v5143_v45, 0.0  ;;  %v5152_v55 = vunpack.c.h.bf16 (!%p609_p8), %v5264_v47  ;;  %v5151_v56 = vunpack.c.l.bf16 (!%p609_p8), %v5264_v47  ;;  %v5278_v10 = vld [vmem:[%s5765_s28 + $0x90] sm:$0xff] (!%p609_p8)   ;;  %v5279_v11 = vld [vmem:[%s5765_s28 + $0x98] sm:$0xff] (!%p609_p8)   ;;  %v5280_v24 = vld [vmem:[%s5765_s28 + $0xa0] sm:$0xff] (!%p609_p8)  }
  0x30   : > { %v5156_v57 = vunpack.c.h.bf16 %v5265_v48  ;;  %v5155_v58 = vunpack.c.l.bf16 %v5265_v48  ;;  %v5160_v59 = vunpack.c.h.bf16 %v5266_v49  ;;  %v5159_v60 = vunpack.c.l.bf16 %v5266_v49  ;;  %v5281_v25 = vld [vmem:[%s5765_s28 + $0xa8] sm:$0xff]   ;;  %v5282_v30 = vld [vmem:[%s5765_s28 + $0xb0] sm:$0xff]   ;;  %v5283_v31 = vld [vmem:[%s5765_s28 + $0xb8] sm:$0xff]  }
  0x31   : > { %v5164_v61 = vunpack.c.h.bf16 %v5267_v54  ;;  %v5163_v62 = vunpack.c.l.bf16 %v5267_v54  ;;  %v813_v63 = vsel %vm791_vm0, %v5148_v52, 0.0  ;;  %v810_v0 = vsel %vm791_vm0, %v5147_v53, 0.0  ;;  %v5284_v44 = vld [vmem:[%s5765_s28 + $0xc0] sm:$0xff]   ;;  %v5285_v45 = vld [vmem:[%s5765_s28 + $0xc8] sm:$0xff]  }
  0x32   : > { %v819_v2 = vsel %vm791_vm0, %v5152_v55, 0.0  ;;  %v816_v3 = vsel %vm791_vm0, %v5151_v56, 0.0  ;;  %v825_v6 = vsel %vm791_vm0, %v5156_v57, 0.0  ;;  %v822_v7 = vsel %vm791_vm0, %v5155_v58, 0.0 }
  0x33   : > { %802 = vadd.xlane.f32.xlu1 %v801_v42  ;;  %796 = vadd.xlane.f32.xlu0 %v795_v43  ;;  %v5793_v8 = vsel %vm791_vm0, %v5160_v59, 0.0  ;;  %v5796_v9 = vsel %vm791_vm0, %v5159_v60, 0.0  ;;  %v5801_v12 = vsel %vm791_vm0, %v5164_v61, 0.0  ;;  %v5804_v13 = vsel %vm791_vm0, %v5163_v62, 0.0 }
  0x34   : > { %v5168_v14 = vunpack.c.h.bf16 %v5784_v1  ;;  %v5167_v15 = vunpack.c.l.bf16 %v5784_v1  ;;  %v5200_v16 = vunpack.c.h.bf16 %v5276_v4  ;;  %v5199_v17 = vunpack.c.l.bf16 %v5276_v4 }
  0x35   : > { %v5204_v18 = vunpack.c.h.bf16 %v5277_v5  ;;  %v5203_v19 = vunpack.c.l.bf16 %v5277_v5  ;;  %v5208_v20 = vunpack.c.h.bf16 %v5278_v10  ;;  %v5207_v21 = vunpack.c.l.bf16 %v5278_v10  ;;  %v5291_v10 = vld [vmem:[%s5765_s28 + $0xf8] sm:$0xff]  }
  0x36   : > { %v5212_v22 = vunpack.c.h.bf16 %v5279_v11  ;;  %v5211_v23 = vunpack.c.l.bf16 %v5279_v11  ;;  %v5811_v26 = vsel %vm791_vm0, %v5200_v16, 0.0  ;;  %v5814_v27 = vsel %vm791_vm0, %v5199_v17, 0.0 }
  0x37   : > { %808 = vadd.xlane.f32.xlu1 %v807_v50  ;;  %805 = vadd.xlane.f32.xlu0 %v804_v51  ;;  %v5817_v28 = vsel %vm791_vm0, %v5204_v18, 0.0  ;;  %v5820_v29 = vsel %vm791_vm0, %v5203_v19, 0.0  ;;  %v5825_v32 = vsel %vm791_vm0, %v5208_v20, 0.0  ;;  %v5828_v33 = vsel %vm791_vm0, %v5207_v21, 0.0  ;;  %v5286_v50 = vld [vmem:[%s5765_s28 + $0xd0] sm:$0xff]   ;;  %v5287_v51 = vld [vmem:[%s5765_s28 + $0xd8] sm:$0xff]  }
  0x38   : > { %v5831_v34 = vsel %vm791_vm0, %v5212_v22, 0.0  ;;  %v5834_v35 = vsel %vm791_vm0, %v5211_v23, 0.0  ;;  %v5216_v36 = vunpack.c.h.bf16 %v5280_v24  ;;  %v5215_v37 = vunpack.c.l.bf16 %v5280_v24  ;;  %v5269_v23 = vld [vmem:[%s5765_s28 + $0x48] sm:$0xff]  }
  0x39   : > { %v5219_v38 = vunpack.c.l.bf16 %v5281_v25  ;;  %v5220_v39 = vunpack.c.h.bf16 %v5281_v25  ;;  %v5223_v40 = vunpack.c.l.bf16 %v5282_v30  ;;  %v5224_v41 = vunpack.c.h.bf16 %v5282_v30 }
  0x3a   : > { %v5227_v42 = vunpack.c.l.bf16 %v5283_v31  ;;  %v5228_v43 = vunpack.c.h.bf16 %v5283_v31  ;;  %v5839_v46 = vsel %vm791_vm0, %v5216_v36, 0.0  ;;  %v5842_v47 = vsel %vm791_vm0, %v5215_v37, 0.0 }
  0x3b   : > { %814 = vadd.xlane.f32.xlu1 %v813_v63  ;;  %811 = vadd.xlane.f32.xlu0 %v810_v0  ;;  %v5845_v48 = vsel %vm791_vm0, %v5219_v38, 0.0  ;;  %v5848_v49 = vsel %vm791_vm0, %v5220_v39, 0.0  ;;  %v5853_v52 = vsel %vm791_vm0, %v5223_v40, 0.0  ;;  %v5856_v53 = vsel %vm791_vm0, %v5224_v41, 0.0  ;;  %v5288_v0 = vld [vmem:[%s5765_s28 + $0xe0] sm:$0xff]  }
  0x3c   : > { %v5859_v54 = vsel %vm791_vm0, %v5227_v42, 0.0  ;;  %v5862_v55 = vsel %vm791_vm0, %v5228_v43, 0.0  ;;  %v5231_v56 = vunpack.c.l.bf16 %v5284_v44  ;;  %v5232_v57 = vunpack.c.h.bf16 %v5284_v44  ;;  %v5270_v44 = vld [vmem:[%s5765_s28 + $0x50] sm:$0xff]  }
  0x3d   : > { %v5235_v58 = vunpack.c.l.bf16 %v5285_v45  ;;  %v5236_v59 = vunpack.c.h.bf16 %v5285_v45  ;;  %v5239_v60 = vunpack.c.l.bf16 %v5286_v50  ;;  %v5240_v61 = vunpack.c.h.bf16 %v5286_v50 }
  0x3e   : > { %v5243_v62 = vunpack.c.l.bf16 %v5287_v51  ;;  %v5244_v63 = vunpack.c.h.bf16 %v5287_v51  ;;  %v5870_v4 = vsel %vm791_vm0, %v5232_v57, 0.0  ;;  %v5247_v19 = vunpack.c.l.bf16 %v5288_v0  ;;  %v5271_v57 = vld [vmem:[%s5765_s28 + $0x58] sm:$0xff]  }
  0x3f   : > { %820 = vadd.xlane.f32.xlu1 %v819_v2  ;;  %817 = vadd.xlane.f32.xlu0 %v816_v3  ;;  %v5289_v2 = vld [vmem:[%s5765_s28 + $0xe8] sm:$0xff]   ;;  %v5867_v3 = vsel %vm791_vm0, %v5231_v56, 0.0  ;;  %v5873_v5 = vsel %vm791_vm0, %v5235_v58, 0.0  ;;  %v5883_v11 = vsel %vm791_vm0, %v5239_v60, 0.0  ;;  %v5886_v16 = vsel %vm791_vm0, %v5240_v61, 0.0  ;;  %v5272_v60 = vld [vmem:[%s5765_s28 + $0x60] sm:$0xff]  }
  0x40   : > { %v5889_v17 = vsel %vm791_vm0, %v5243_v62, 0.0  ;;  %v5892_v18 = vsel %vm791_vm0, %v5244_v63, 0.0  ;;  %v5248_v20 = vunpack.c.h.bf16 %v5288_v0  ;;  %v5251_v21 = vunpack.c.l.bf16 %v5289_v2 }
  0x41   : > { %v5252_v22 = vunpack.c.h.bf16 %v5289_v2  ;;  %v5260_v25 = vunpack.c.h.bf16 %v5291_v10  ;;  %v5896_v30 = vsel %vm791_vm0, %v5247_v19, 0.0  ;;  %v843_v42 = vsel %vm791_vm0, %v5168_v14, 0.0  ;;  %v5273_v2 = vld [vmem:[%s5765_s28 + $0x68] sm:$0xff]  }
  0x42   : > { %v5899_v31 = vsel %vm791_vm0, %v5248_v20, 0.0  ;;  %v5902_v36 = vsel %vm791_vm0, %v5251_v21, 0.0  ;;  %v5171_v43 = vunpack.c.l.bf16 %v5269_v23  ;;  %v5590_v45 = vmov 0   ;;  %v5274_v21 = vld [vmem:[%s5765_s28 + $0x70] sm:$0xff]  }
  0x43   : > { %826 = vadd.xlane.f32.xlu1 %v825_v6  ;;  %823 = vadd.xlane.f32.xlu0 %v822_v7  ;;  %v5876_v6 = vsel %vm791_vm0, %v5236_v59, 0.0  ;;  %v5290_v7 = vld [vmem:[%s5765_s28 + $0xf0] sm:$0xff]   ;;  %v5905_v37 = vsel %vm791_vm0, %v5252_v22, 0.0  ;;  %v5919_v41 = vsel %vm791_vm0, %v5260_v25, 0.0  ;;  %v5176_v56 = vunpack.c.h.bf16 %v5270_v44 }
  0x44   : > { %v5256_v24 = vunpack.c.h.bf16 %v5290_v7  ;;  %5541 = vset.pattern.permute.xlu0 %v5590_v45  ;;  %5542 = vset.pattern.permute.xlu1 %v5590_v45  ;;  %v846_v51 = vsel %vm791_vm0, %v5171_v43, 0.0  ;;  %v5175_v14 = vunpack.c.l.bf16 %v5270_v44  ;;  %v5180_v58 = vunpack.c.h.bf16 %v5271_v57 }
  0x45   : > { %v855_v1 = vsel %vm791_vm0, %v5176_v56, 0.0  ;;  %v5179_v59 = vunpack.c.l.bf16 %v5271_v57  ;;  %v5184_v63 = vunpack.c.h.bf16 %v5272_v60  ;;  %v5183_v0 = vunpack.c.l.bf16 %v5272_v60 }
  0x46   : > { %v5913_v39 = vsel %vm791_vm0, %v5256_v24, 0.0  ;;  %v861_v61 = vsel %vm791_vm0, %v5180_v58, 0.0  ;;  %v5188_v19 = vunpack.c.h.bf16 %v5273_v2  ;;  %v5187_v20 = vunpack.c.l.bf16 %v5273_v2 }
  0x47   : > { %832 = vadd.xlane.f32.xlu1 %v5793_v8  ;;  %829 = vadd.xlane.f32.xlu0 %v5796_v9  ;;  %v5255_v8 = vunpack.c.l.bf16 %v5290_v7  ;;  %v5259_v9 = vunpack.c.l.bf16 %v5291_v10  ;;  %v858_v62 = vsel %vm791_vm0, %v5179_v59, 0.0  ;;  %v867_v7 = vsel %vm791_vm0, %v5184_v63, 0.0 }
  0x48   : > { %v864_v10 = vsel %vm791_vm0, %v5183_v0, 0.0  ;;  %v873_v22 = vsel %vm791_vm0, %v5188_v19, 0.0  ;;  %v5191_v24 = vunpack.c.l.bf16 %v5274_v21  ;;  %vm4229_vm15 = vcmask 1048512  }
  0x49   : > { %v5910_v38 = vsel %vm791_vm0, %v5255_v8, 0.0  ;;  %v5916_v40 = vsel %vm791_vm0, %v5259_v9, 0.0  ;;  %v5192_v8 = vunpack.c.h.bf16 %v5274_v21  ;;  %v5275_v9 = vld [vmem:[%s5765_s28 + $0x78] sm:$0xff]  }
  0x4b   : > { %838 = vadd.xlane.f32.xlu1 %v5801_v12  ;;  %835 = vadd.xlane.f32.xlu0 %v5804_v13  ;;  %v840_v12 = vsel %vm791_vm0, %v5167_v15, 0.0  ;;  %v5172_v13 = vunpack.c.h.bf16 %v5269_v23  ;;  %v852_v15 = vsel %vm791_vm0, %v5175_v14, 0.0  ;;  %v870_v23 = vsel %vm791_vm0, %v5187_v20, 0.0 }
  0x4c   : > { %v879_v25 = vsel %vm791_vm0, %v5192_v8, 0.0 }
  0x4d   : > { %v849_v50 = vsel %vm791_vm0, %v5172_v13, 0.0  ;;  %v5195_v13 = vunpack.c.l.bf16 %v5275_v9 }
  0x4f   : > { %844 = vadd.xlane.f32.xlu1 %v843_v42  ;;  %841 = vadd.xlane.f32.xlu0 %v840_v12  ;;  %v876_v42 = vsel %vm791_vm0, %v5191_v24, 0.0  ;;  %v5196_v12 = vunpack.c.h.bf16 %v5275_v9  ;;  %v882_v44 = vsel %vm791_vm0, %v5195_v13, 0.0 }
  0x51   : > { %v885_v43 = vsel %vm791_vm0, %v5196_v12, 0.0  ;;  %vm4468_vm0 = vcmask 1041409  }
  0x53   : > { %850 = vadd.xlane.f32.xlu1 %v849_v50  ;;  %847 = vadd.xlane.f32.xlu0 %v846_v51 }
  0x57   : > { %856 = vadd.xlane.f32.xlu1 %v855_v1  ;;  %853 = vadd.xlane.f32.xlu0 %v852_v15 }
  0x5b   : > { %862 = vadd.xlane.f32.xlu1 %v861_v61  ;;  %859 = vadd.xlane.f32.xlu0 %v858_v62 }
  0x5f   : > { %868 = vadd.xlane.f32.xlu1 %v867_v7  ;;  %865 = vadd.xlane.f32.xlu0 %v864_v10 }
  0x63   : > { %874 = vadd.xlane.f32.xlu1 %v873_v22  ;;  %871 = vadd.xlane.f32.xlu0 %v870_v23 }
  0x67   : > { %880 = vadd.xlane.f32.xlu1 %v879_v25  ;;  %877 = vadd.xlane.f32.xlu0 %v876_v42 }
  0x6b   : > { %886 = vadd.xlane.f32.xlu1 %v885_v43  ;;  %883 = vadd.xlane.f32.xlu0 %v882_v44 }
  0x6f   : > { %892 = vadd.xlane.f32.xlu1 %v5811_v26  ;;  %889 = vadd.xlane.f32.xlu0 %v5814_v27  ;;  %v1051_v26 = vlaneseq  ;;  %v5591_v27 = vmov 269488144  }
  0x73   : > { %898 = vadd.xlane.f32.xlu1 %v5817_v28  ;;  %895 = vadd.xlane.f32.xlu0 %v5820_v29  ;;  %v1049_v28 = vunpack.c.l.s4 %v5591_v27  ;;  %v5592_v29 = vmov 842150450  }
  0x77   : > { %904 = vadd.xlane.f32.xlu1 %v5825_v32  ;;  %901 = vadd.xlane.f32.xlu0 %v5828_v33  ;;  %v1056_v32 = vunpack.c.l.s4 %v5592_v29  ;;  %v5593_v33 = vmov 1414812756  }
  0x7b   : > { %910 = vadd.xlane.f32.xlu1 %v5831_v34  ;;  %907 = vadd.xlane.f32.xlu0 %v5834_v35  ;;  %v1063_v34 = vunpack.c.l.s4 %v5593_v33  ;;  %v5594_v35 = vmov 1987475062  }
  0x7f   : > { %916 = vadd.xlane.f32.xlu1 %v5839_v46  ;;  %913 = vadd.xlane.f32.xlu0 %v5842_v47  ;;  %v1070_v46 = vunpack.c.l.s4 %v5594_v35  ;;  %v5980_v47 = vshrl.u32 %v1051_v26, 7 }
  0x83   : > { %919 = vadd.xlane.f32.xlu0 %v5845_v48  ;;  %922 = vadd.xlane.f32.xlu1 %v5848_v49  ;;  %v1050_v48 = vunpack.c.0.s8 %v1049_v28  ;;  %v1057_v49 = vunpack.c.0.s8 %v1056_v32 }
  0x87   : > { %925 = vadd.xlane.f32.xlu0 %v5853_v52  ;;  %928 = vadd.xlane.f32.xlu1 %v5856_v53  ;;  %v1064_v52 = vunpack.c.0.s8 %v1063_v34  ;;  %v1071_v53 = vunpack.c.0.s8 %v1070_v46 }
  0x8b   : > { %931 = vadd.xlane.f32.xlu0 %v5859_v54  ;;  %934 = vadd.xlane.f32.xlu1 %v5862_v55  ;;  %v5595_v54 = vmov 1983009808  }
  0x8c   : > { %v2843_v55 = vunpack.c.l.s4 %v5595_v54 }
  0x8f   : > { %937 = vadd.xlane.f32.xlu0 %v5867_v3  ;;  %940 = vadd.xlane.f32.xlu1 %v5870_v4  ;;  %v5983_v3 = vsub.s32 %v1050_v48, %v5980_v47  ;;  %v5986_v4 = vsub.s32 %v1057_v49, %v5980_v47 }
  0x93   : > { %943 = vadd.xlane.f32.xlu0 %v5873_v5  ;;  %946 = vadd.xlane.f32.xlu1 %v5876_v6  ;;  %v5989_v5 = vsub.s32 %v1064_v52, %v5980_v47  ;;  %v5992_v6 = vsub.s32 %v1071_v53, %v5980_v47 }
  0x97   : > { %949 = vadd.xlane.f32.xlu0 %v5883_v11  ;;  %952 = vadd.xlane.f32.xlu1 %v5886_v16  ;;  %v2844_v11 = vunpack.c.0.s8 %v2843_v55 }
  0x9b   : > { %955 = vadd.xlane.f32.xlu0 %v5889_v17  ;;  %958 = vadd.xlane.f32.xlu1 %v5892_v18 }
  0x9f   : > { %961 = vadd.xlane.f32.xlu0 %v5896_v30  ;;  %964 = vadd.xlane.f32.xlu1 %v5899_v31 }
  0xa3   : > { %967 = vadd.xlane.f32.xlu0 %v5902_v36  ;;  %970 = vadd.xlane.f32.xlu1 %v5905_v37 }
  0xa7   : > { %973 = vadd.xlane.f32.xlu0 %v5910_v38  ;;  %976 = vadd.xlane.f32.xlu1 %v5913_v39 }
  0xab   : > { %979 = vadd.xlane.f32.xlu0 %v5916_v40  ;;  %982 = vadd.xlane.f32.xlu1 %v5919_v41  ;;  %v6003_v41 = vsub.s32 %v2844_v11, %v5980_v47 }
  0xbc   : > { %v800_v16 = vpop.xlane.xlu1 %799  ;;  %v794_v17 = vpop.xlane.xlu0 %793 }
  0xbd   : > { %v1110_v18 = vrot.slane %v800_v16, %v5983_v3  ;;  %v1117_v30 = vrot.slane %v800_v16, %v5986_v4  ;;  %v1124_v31 = vrot.slane %v800_v16, %v5989_v5  ;;  %v1131_v36 = vrot.slane %v800_v16, %v5992_v6 }
  0xbe   : > { %v1054_v37 = vrot.slane %v794_v17, %v5983_v3  ;;  %v1061_v38 = vrot.slane %v794_v17, %v5986_v4  ;;  %v1068_v39 = vrot.slane %v794_v17, %v5989_v5  ;;  %v1075_v40 = vrot.slane %v794_v17, %v5992_v6 }
  0xbf   : > { %v2874_v1 = vcombine.low %v1110_v18, %v1117_v30  ;;  %v2875_v15 = vcombine.low %v1124_v31, %v1131_v36 }
  0xc0   : > { %v803_v45 = vpop.xlane.xlu1 %802  ;;  %v797_v50 = vpop.xlane.xlu0 %796  ;;  %v2840_v51 = vcombine.low %v1054_v37, %v1061_v38  ;;  %v2841_v56 = vcombine.low %v1068_v39, %v1075_v40 }
  0xc1   : > { %v1138_v14 = vrot.slane %v803_v45, %v5983_v3  ;;  %v1145_v57 = vrot.slane %v803_v45, %v5986_v4  ;;  %v1082_v58 = vrot.slane %v797_v50, %v5983_v3  ;;  %v1089_v59 = vrot.slane %v797_v50, %v5986_v4 }
  0xc2   : > { %v1096_v60 = vrot.slane %v797_v50, %v5989_v5  ;;  %v1103_v61 = vrot.slane %v797_v50, %v5992_v6  ;;  %v1152_v62 = vrot.slane %v803_v45, %v5989_v5  ;;  %v1159_v63 = vrot.slane %v803_v45, %v5992_v6 }
  0xc3   : > { %v2848_v0 = vrot.slane %v2840_v51, %v6003_v41  ;;  %v2855_v2 = vrot.slane %v2841_v56, %v6003_v41  ;;  %v2857_v19 = vcombine.low %v1082_v58, %v1089_v59  ;;  %v2882_v21 = vrot.slane %v2874_v1, %v6003_v41 }
  0xc4   : > { %v809_v7 = vpop.xlane.xlu1 %808  ;;  %v806_v10 = vpop.xlane.xlu0 %805  ;;  %v2858_v20 = vcombine.low %v1096_v60, %v1103_v61  ;;  %v2889_v22 = vrot.slane %v2875_v15, %v6003_v41  ;;  %v2891_v23 = vcombine.low %v1138_v14, %v1145_v57  ;;  %v2892_v25 = vcombine.low %v1152_v62, %v1159_v63 }
  0xc5   : > { %v2856_v8 = vcombine.low %v2848_v0, %v2855_v2  ;;  %v2865_v24 = vrot.slane %v2857_v19, %v6003_v41  ;;  %v1166_v42 = vrot.slane %v806_v10, %v5983_v3  ;;  %v1173_v12 = vrot.slane %v806_v10, %v5986_v4 }
  0xc6   : > { %v2872_v9 = vrot.slane %v2858_v20, %v6003_v41  ;;  %v1180_v13 = vrot.slane %v806_v10, %v5989_v5  ;;  %v1187_v43 = vrot.slane %v806_v10, %v5992_v6  ;;  %v1194_v28 = vrot.slane %v809_v7, %v5983_v3 }
  0xc7   : > { %3929 = vperm.xlu0 %5541, %v2856_v8   ;;  %v1201_v29 = vrot.slane %v809_v7, %v5986_v4  ;;  %v1208_v32 = vrot.slane %v809_v7, %v5989_v5  ;;  %v1215_v33 = vrot.slane %v809_v7, %v5992_v6  ;;  %v2890_v35 = vcombine.low %v2882_v21, %v2889_v22 }
  0xc8   : > { %v6023_v44 = vpop.xlane.xlu1 %814  ;;  %v812_v27 = vpop.xlane.xlu0 %811  ;;  %v2873_v34 = vcombine.low %v2865_v24, %v2872_v9  ;;  %v2899_v46 = vrot.slane %v2891_v23, %v6003_v41  ;;  %v2906_v53 = vrot.slane %v2892_v25, %v6003_v41  ;;  %v2908_v54 = vcombine.low %v1166_v42, %v1173_v12 }
  0xc9   : > { %v1250_v48 = vrot.slane %v6023_v44, %v5983_v3  ;;  %v2909_v55 = vcombine.low %v1180_v13, %v1187_v43  ;;  %v1222_v30 = vrot.slane %v812_v27, %v5983_v3  ;;  %v1229_v31 = vrot.slane %v812_v27, %v5986_v4 }
  0xca   : > { %3932 = vperm.xlu1 %5542, %v2873_v34   ;;  %v1236_v36 = vrot.slane %v812_v27, %v5989_v5  ;;  %v1243_v37 = vrot.slane %v812_v27, %v5992_v6  ;;  %v1257_v38 = vrot.slane %v6023_v44, %v5986_v4  ;;  %v1264_v39 = vrot.slane %v6023_v44, %v5989_v5 }
  0xcb   : > { %v1271_v50 = vrot.slane %v6023_v44, %v5992_v6  ;;  %v2907_v14 = vcombine.low %v2899_v46, %v2906_v53  ;;  %v2916_v57 = vrot.slane %v2908_v54, %v6003_v41  ;;  %v2923_v1 = vrot.slane %v2909_v55, %v6003_v41 }
  0xcc   : > { %v821_v49 = vpop.xlane.xlu1 %820  ;;  %v6032_v52 = vpop.xlane.xlu0 %817  ;;  %v2925_v61 = vcombine.low %v1194_v28, %v1201_v29  ;;  %v2926_v62 = vcombine.low %v1208_v32, %v1215_v33  ;;  %v2942_v63 = vcombine.low %v1222_v30, %v1229_v31  ;;  %v2943_v0 = vcombine.low %v1236_v36, %v1243_v37 }
  0xcd   : > { %v1306_v11 = vrot.slane %v821_v49, %v5983_v3  ;;  %v1313_v16 = vrot.slane %v821_v49, %v5986_v4  ;;  %v1320_v17 = vrot.slane %v821_v49, %v5989_v5  ;;  %v1327_v18 = vrot.slane %v821_v49, %v5992_v6 }
  0xce   : > { %3935 = vperm.xlu1 %5542, %v2890_v35   ;;  %v1278_v20 = vrot.slane %v6032_v52, %v5983_v3  ;;  %v1285_v21 = vrot.slane %v6032_v52, %v5986_v4  ;;  %v1292_v22 = vrot.slane %v6032_v52, %v5989_v5  ;;  %v1299_v23 = vrot.slane %v6032_v52, %v5992_v6 }
  0xcf   : > { %v2993_v40 = vcombine.low %v1306_v11, %v1313_v16  ;;  %v2994_v45 = vcombine.low %v1320_v17, %v1327_v18  ;;  %v2924_v13 = vcombine.low %v2916_v57, %v2923_v1  ;;  %v2933_v43 = vrot.slane %v2925_v61, %v6003_v41 }
  0xd0   : > { %v827_v51 = vpop.xlane.xlu1 %826  ;;  %v6049_v56 = vpop.xlane.xlu0 %823  ;;  %v2940_v44 = vrot.slane %v2926_v62, %v6003_v41  ;;  %v2950_v27 = vrot.slane %v2942_v63, %v6003_v41  ;;  %v2957_v52 = vrot.slane %v2943_v0, %v6003_v41  ;;  %v2959_v53 = vcombine.low %v1250_v48, %v1257_v38 }
  0xd1   : > { %v1362_v15 = vrot.slane %v827_v51, %v5983_v3  ;;  %v1369_v58 = vrot.slane %v827_v51, %v5986_v4  ;;  %v1376_v59 = vrot.slane %v827_v51, %v5989_v5  ;;  %v1383_v60 = vrot.slane %v827_v51, %v5992_v6 }
  0xd2   : > { %v3001_v2 = vrot.slane %v2993_v40, %v6003_v41  ;;  %v3008_v7 = vrot.slane %v2994_v45, %v6003_v41  ;;  %3938 = vperm.xlu1 %5542, %v2907_v14   ;;  %v1334_v34 = vrot.slane %v6049_v56, %v5983_v3  ;;  %v1341_v16 = vrot.slane %v6049_v56, %v5986_v4 }
  0xd3   : > { %v3027_v10 = vcombine.low %v1362_v15, %v1369_v58  ;;  %v3028_v19 = vcombine.low %v1376_v59, %v1383_v60  ;;  %v1348_v17 = vrot.slane %v6049_v56, %v5989_v5  ;;  %v2960_v30 = vcombine.low %v1264_v39, %v1271_v50 }
  0xd4   : > { %v833_v8 = vpop.xlane.xlu1 %832  ;;  %v6067_v24 = vpop.xlane.xlu0 %829  ;;  %v3009_v28 = vcombine.low %v3001_v2, %v3008_v7  ;;  %v2941_v36 = vcombine.low %v2933_v43, %v2940_v44  ;;  %v1355_v38 = vrot.slane %v6049_v56, %v5992_v6  ;;  %v2958_v51 = vcombine.low %v2950_v27, %v2957_v52 }
  0xd5   : > { %v1418_v9 = vrot.slane %v833_v8, %v5983_v3  ;;  %v1425_v25 = vrot.slane %v833_v8, %v5986_v4  ;;  %v1432_v42 = vrot.slane %v833_v8, %v5989_v5  ;;  %v1439_v12 = vrot.slane %v833_v8, %v5992_v6 }
  0xd6   : > { %v3035_v29 = vrot.slane %v3027_v10, %v6003_v41  ;;  %v3042_v32 = vrot.slane %v3028_v19, %v6003_v41  ;;  %3956 = vperm.xlu0 %5541, %v3009_v28   ;;  %3941 = vperm.xlu1 %5542, %v2924_v13   ;;  %v2967_v58 = vrot.slane %v2959_v53, %v6003_v41 }
  0xd7   : > { %v3061_v33 = vcombine.low %v1418_v9, %v1425_v25  ;;  %v3062_v49 = vcombine.low %v1432_v42, %v1439_v12  ;;  %v2974_v56 = vrot.slane %v2960_v30, %v6003_v41  ;;  %v2976_v59 = vcombine.low %v1278_v20, %v1285_v21 }
  0xd8   : > { %v839_v35 = vpop.xlane.xlu1 %838  ;;  %v6080_v46 = vpop.xlane.xlu0 %835  ;;  %v3043_v31 = vcombine.low %v3035_v29, %v3042_v32  ;;  %v2977_v63 = vcombine.low %v1292_v22, %v1299_v23  ;;  %v1390_v0 = vrot.slane %v6067_v24, %v5983_v3  ;;  %v1397_v2 = vrot.slane %v6067_v24, %v5986_v4 }
  0xd9   : > { %v1474_v54 = vrot.slane %v839_v35, %v5983_v3  ;;  %v1481_v55 = vrot.slane %v839_v35, %v5986_v4  ;;  %v1488_v11 = vrot.slane %v839_v35, %v5989_v5  ;;  %v1495_v18 = vrot.slane %v839_v35, %v5992_v6 }
  0xda   : > { %v3069_v48 = vrot.slane %v3061_v33, %v6003_v41  ;;  %v3076_v37 = vrot.slane %v3062_v49, %v6003_v41  ;;  %3962 = vperm.xlu0 %5541, %v3043_v31   ;;  %3944 = vperm.xlu1 %5542, %v2941_v36   ;;  %v1404_v22 = vrot.slane %v6067_v24, %v5989_v5 }
  0xdb   : > { %v3095_v14 = vcombine.low %v1474_v54, %v1481_v55  ;;  %v3096_v57 = vcombine.low %v1488_v11, %v1495_v18  ;;  %v2975_v25 = vcombine.low %v2967_v58, %v2974_v56  ;;  %v2984_v42 = vrot.slane %v2976_v59, %v6003_v41 }
  0xdc   : > { %v845_v40 = vpop.xlane.xlu1 %844  ;;  %v6095_v45 = vpop.xlane.xlu0 %841  ;;  %v3077_v60 = vcombine.low %v3069_v48, %v3076_v37  ;;  %v2991_v44 = vrot.slane %v2977_v63, %v6003_v41  ;;  %v3010_v33 = vcombine.low %v1334_v34, %v1341_v16  ;;  %v3011_v35 = vcombine.low %v1348_v17, %v1355_v38 }
  0xdd   : > { %v1530_v1 = vrot.slane %v845_v40, %v5983_v3  ;;  %v1537_v39 = vrot.slane %v845_v40, %v5986_v4  ;;  %v1544_v50 = vrot.slane %v845_v40, %v5989_v5  ;;  %v1551_v15 = vrot.slane %v845_v40, %v5992_v6 }
  0xde   : > { %v3103_v61 = vrot.slane %v3095_v14, %v6003_v41  ;;  %v3110_v62 = vrot.slane %v3096_v57, %v6003_v41  ;;  %3968 = vperm.xlu0 %5541, %v3077_v60   ;;  %3947 = vperm.xlu1 %5542, %v2958_v51   ;;  %v1411_v54 = vrot.slane %v6067_v24, %v5992_v6 }
  0xdf   : > { %v3129_v19 = vcombine.low %v1530_v1, %v1537_v39  ;;  %v3130_v8 = vcombine.low %v1544_v50, %v1551_v15  ;;  %v1446_v55 = vrot.slane %v6080_v46, %v5983_v3  ;;  %v1453_v11 = vrot.slane %v6080_v46, %v5986_v4 }
  0xe0   : > { %v851_v7 = vpop.xlane.xlu1 %850  ;;  %v6109_v10 = vpop.xlane.xlu0 %847  ;;  %v3111_v12 = vcombine.low %v3103_v61, %v3110_v62  ;;  %v2992_v17 = vcombine.low %v2984_v42, %v2991_v44  ;;  %v3018_v48 = vrot.slane %v3010_v33, %v6003_v41  ;;  %v3025_v24 = vrot.slane %v3011_v35, %v6003_v41 }
  0xe1   : > { %v1586_v20 = vrot.slane %v851_v7, %v5983_v3  ;;  %v1593_v21 = vrot.slane %v851_v7, %v5986_v4  ;;  %v1600_v9 = vrot.slane %v851_v7, %v5989_v5  ;;  %v1607_v23 = vrot.slane %v851_v7, %v5992_v6 }
  0xe2   : > { %v3137_v13 = vrot.slane %v3129_v19, %v6003_v41  ;;  %v3144_v43 = vrot.slane %v3130_v8, %v6003_v41  ;;  %3974 = vperm.xlu0 %5541, %v3111_v12   ;;  %3950 = vperm.xlu1 %5542, %v2975_v25   ;;  %v1460_v40 = vrot.slane %v6080_v46, %v5989_v5 }
  0xe3   : > { %v3163_v29 = vcombine.low %v1586_v20, %v1593_v21  ;;  %v3164_v32 = vcombine.low %v1600_v9, %v1607_v23  ;;  %v1467_v57 = vrot.slane %v6080_v46, %v5992_v6  ;;  %v1502_v1 = vrot.slane %v6095_v45, %v5983_v3 }
  0xe4   : > { %v857_v27 = vpop.xlane.xlu1 %856  ;;  %v6121_v28 = vpop.xlane.xlu0 %853  ;;  %v3145_v16 = vcombine.low %v3137_v13, %v3144_v43  ;;  %v1509_v39 = vrot.slane %v6095_v45, %v5986_v4  ;;  %v1516_v50 = vrot.slane %v6095_v45, %v5989_v5  ;;  %v3026_v56 = vcombine.low %v3018_v48, %v3025_v24 }
  0xe5   : > { %v1642_v49 = vrot.slane %v857_v27, %v5983_v3  ;;  %v1649_v52 = vrot.slane %v857_v27, %v5986_v4  ;;  %v1656_v53 = vrot.slane %v857_v27, %v5989_v5  ;;  %v1663_v34 = vrot.slane %v857_v27, %v5992_v6 }
  0xe6   : > { %v3171_v18 = vrot.slane %v3163_v29, %v6003_v41  ;;  %v3178_v30 = vrot.slane %v3164_v32, %v6003_v41  ;;  %3980 = vperm.xlu0 %5541, %v3145_v16   ;;  %3953 = vperm.xlu1 %5542, %v2992_v17   ;;  %v3044_v63 = vcombine.low %v1390_v0, %v1397_v2 }
  0xe7   : > { %v3197_v37 = vcombine.low %v1642_v49, %v1649_v52  ;;  %v3198_v38 = vcombine.low %v1656_v53, %v1663_v34  ;;  %v3045_v7 = vcombine.low %v1404_v22, %v1411_v54  ;;  %v1523_v19 = vrot.slane %v6095_v45, %v5992_v6 }
  0xe8   : > { %v863_v31 = vpop.xlane.xlu1 %862  ;;  %v6135_v36 = vpop.xlane.xlu0 %859  ;;  %v3179_v58 = vcombine.low %v3171_v18, %v3178_v30  ;;  %v1558_v8 = vrot.slane %v6109_v10, %v5983_v3  ;;  %v1565_v21 = vrot.slane %v6109_v10, %v5986_v4  ;;  %v1572_v9 = vrot.slane %v6109_v10, %v5989_v5 }
  0xe9   : > { %v1698_v51 = vrot.slane %v863_v31, %v5983_v3  ;;  %v1705_v14 = vrot.slane %v863_v31, %v5986_v4  ;;  %v1712_v15 = vrot.slane %v863_v31, %v5989_v5  ;;  %v3205_v59 = vrot.slane %v3197_v37, %v6003_v41 }
  0xea   : > { %v1719_v60 = vrot.slane %v863_v31, %v5992_v6  ;;  %v3212_v46 = vrot.slane %v3198_v38, %v6003_v41  ;;  %3986 = vperm.xlu0 %5541, %v3179_v58   ;;  %3959 = vperm.xlu1 %5542, %v3026_v56   ;;  %v1579_v23 = vrot.slane %v6109_v10, %v5992_v6 }
  0xeb   : > { %v3231_v20 = vcombine.low %v1698_v51, %v1705_v14  ;;  %v3052_v25 = vrot.slane %v3044_v63, %v6003_v41  ;;  %v3059_v42 = vrot.slane %v3045_v7, %v6003_v41  ;;  %v3078_v29 = vcombine.low %v1446_v55, %v1453_v11 }
  0xec   : > { %v869_v61 = vpop.xlane.xlu1 %868  ;;  %v866_v62 = vpop.xlane.xlu0 %865  ;;  %v3213_v22 = vcombine.low %v3205_v59, %v3212_v46  ;;  %v3232_v27 = vcombine.low %v1712_v15, %v1719_v60  ;;  %v1614_v32 = vrot.slane %v6121_v28, %v5983_v3  ;;  %v1621_v33 = vrot.slane %v6121_v28, %v5986_v4 }
  0xed   : > { %v1754_v0 = vrot.slane %v869_v61, %v5983_v3  ;;  %v1761_v2 = vrot.slane %v869_v61, %v5986_v4  ;;  %v1768_v12 = vrot.slane %v869_v61, %v5989_v5  ;;  %v1775_v13 = vrot.slane %v869_v61, %v5992_v6 }
  0xee   : > { %3992 = vperm.xlu0 %5541, %v3213_v22   ;;  %v3060_v35 = vcombine.low %v3052_v25, %v3059_v42  ;;  %v3239_v49 = vrot.slane %v3231_v20, %v6003_v41  ;;  %v1726_v52 = vrot.slane %v866_v62, %v5983_v3  ;;  %v1733_v53 = vrot.slane %v866_v62, %v5986_v4 }
  0xef   : > { %v1740_v54 = vrot.slane %v866_v62, %v5989_v5  ;;  %v1747_v34 = vrot.slane %v866_v62, %v5992_v6  ;;  %v1628_v55 = vrot.slane %v6121_v28, %v5989_v5  ;;  %v1635_v11 = vrot.slane %v6121_v28, %v5992_v6 }
  0xf0   : > { %v875_v43 = vpop.xlane.xlu1 %874  ;;  %v6171_v44 = vpop.xlane.xlu0 %871  ;;  %3965 = vperm.xlu1 %5542, %v3060_v35   ;;  %v3246_v16 = vrot.slane %v3232_v27, %v6003_v41  ;;  %v3079_v17 = vcombine.low %v1460_v40, %v1467_v57  ;;  %v1670_v18 = vrot.slane %v6135_v36, %v5983_v3  ;;  %v3086_v30 = vrot.slane %v3078_v29, %v6003_v41 }
  0xf1   : > { %v3265_v24 = vcombine.low %v1754_v0, %v1761_v2  ;;  %v3266_v37 = vcombine.low %v1768_v12, %v1775_v13  ;;  %v1677_v38 = vrot.slane %v6135_v36, %v5986_v4  ;;  %v1684_v51 = vrot.slane %v6135_v36, %v5989_v5 }
  0xf2   : > { %v3247_v14 = vcombine.low %v3239_v49, %v3246_v16  ;;  %v3093_v15 = vrot.slane %v3079_v17, %v6003_v41  ;;  %v1691_v40 = vrot.slane %v6135_v36, %v5992_v6  ;;  %v6199_v57 = vcombine.low %v1726_v52, %v1733_v53 }
  0xf3   : > { %v6201_v58 = vcombine.low %v1740_v54, %v1747_v34  ;;  %v1810_v56 = vrot.slane %v875_v43, %v5983_v3  ;;  %v1817_v59 = vrot.slane %v875_v43, %v5986_v4  ;;  %v1824_v60 = vrot.slane %v875_v43, %v5989_v5 }
  0xf4   : > { %v6190_v31 = vpop.xlane.xlu1 %880  ;;  %v878_v48 = vpop.xlane.xlu0 %877  ;;  %v1831_v61 = vrot.slane %v875_v43, %v5992_v6  ;;  %3998 = vperm.xlu0 %5541, %v3247_v14   ;;  %v3094_v62 = vcombine.low %v3086_v30, %v3093_v15  ;;  %v3273_v46 = vrot.slane %v3265_v24, %v6003_v41  ;;  %v3280_v63 = vrot.slane %v3266_v37, %v6003_v41 }
  0xf5   : > { %v3112_v7 = vcombine.low %v1502_v1, %v1509_v39  ;;  %v3113_v20 = vcombine.low %v1516_v50, %v1523_v19  ;;  %v1782_v22 = vrot.slane %v6171_v44, %v5983_v3  ;;  %v1789_v25 = vrot.slane %v6171_v44, %v5986_v4 }
  0xf6   : > { %v1796_v42 = vrot.slane %v6171_v44, %v5989_v5  ;;  %v1803_v1 = vrot.slane %v6171_v44, %v5992_v6  ;;  %3971 = vperm.xlu1 %5542, %v3094_v62   ;;  %v1866_v45 = vrot.slane %v6190_v31, %v5983_v3  ;;  %v3281_v39 = vcombine.low %v3273_v46, %v3280_v63 }
  0xf7   : > { %v3120_v50 = vrot.slane %v3112_v7, %v6003_v41  ;;  %v3127_v19 = vrot.slane %v3113_v20, %v6003_v41  ;;  %v1838_v12 = vrot.slane %v878_v48, %v5983_v3  ;;  %v1845_v13 = vrot.slane %v878_v48, %v5986_v4 }
  0xf8   : > { %v6218_v0 = vpop.xlane.xlu1 %886  ;;  %v6220_v2 = vpop.xlane.xlu0 %883  ;;  %v1852_v43 = vrot.slane %v878_v48, %v5989_v5  ;;  %v1859_v27 = vrot.slane %v878_v48, %v5992_v6  ;;  %v1873_v44 = vrot.slane %v6190_v31, %v5986_v4  ;;  %4004 = vperm.xlu0 %5541, %v3281_v39   ;;  %v3299_v35 = vcombine.low %v1810_v56, %v1817_v59 }
  0xf9   : > { %v3128_v29 = vcombine.low %v3120_v50, %v3127_v19  ;;  %v3300_v49 = vcombine.low %v1824_v60, %v1831_v61  ;;  %v1880_v54 = vrot.slane %v6190_v31, %v5989_v5  ;;  %v1887_v34 = vrot.slane %v6190_v31, %v5992_v6 }
  0xfa   : > { %v3146_v16 = vcombine.low %v1558_v8, %v1565_v21  ;;  %v3147_v17 = vcombine.low %v1572_v9, %v1579_v23  ;;  %v6260_v30 = vcombine.low %v1782_v22, %v1789_v25  ;;  %v6262_v48 = vcombine.low %v1796_v42, %v1803_v1 }
  0xfb   : > { %3977 = vperm.xlu1 %5542, %v3128_v29   ;;  %v3307_v31 = vrot.slane %v3299_v35, %v6003_v41  ;;  %v3314_v24 = vrot.slane %v3300_v49, %v6003_v41  ;;  %v6266_v37 = vcombine.low %v1838_v12, %v1845_v13  ;;  %v6268_v14 = vcombine.low %v1852_v43, %v1859_v27 }
  0xfc   : > { %v6240_v52 = vpop.xlane.xlu1 %892  ;;  %v6242_v53 = vpop.xlane.xlu0 %889  ;;  %v3154_v8 = vrot.slane %v3146_v16, %v6003_v41  ;;  %v3161_v21 = vrot.slane %v3147_v17, %v6003_v41  ;;  %v1922_v10 = vrot.slane %v6218_v0, %v5983_v3  ;;  %v1894_v9 = vrot.slane %v6220_v2, %v5983_v3 }
  0xfd   : > { %v1901_v23 = vrot.slane %v6220_v2, %v5986_v4  ;;  %v3315_v15 = vcombine.low %v3307_v31, %v3314_v24  ;;  %v1929_v60 = vrot.slane %v6218_v0, %v5986_v4  ;;  %v3333_v62 = vcombine.low %v1866_v45, %v1873_v44 }
  0xfe   : > { %v3162_v61 = vcombine.low %v3154_v8, %v3161_v21  ;;  %v3334_v46 = vcombine.low %v1880_v54, %v1887_v34  ;;  %v1936_v63 = vrot.slane %v6218_v0, %v5989_v5  ;;  %v1943_v7 = vrot.slane %v6218_v0, %v5992_v6 }
  0xff   : > { %4010 = vperm.xlu0 %5541, %v3315_v15   ;;  %v3180_v20 = vcombine.low %v1614_v32, %v1621_v33  ;;  %v3181_v22 = vcombine.low %v1628_v55, %v1635_v11  ;;  %v1908_v25 = vrot.slane %v6220_v2, %v5989_v5  ;;  %v1915_v0 = vrot.slane %v6220_v2, %v5992_v6 }
 0x100   : > { %v6278_v56 = vpop.xlane.xlu1 %898  ;;  %v6280_v59 = vpop.xlane.xlu0 %895  ;;  %3983 = vperm.xlu1 %5542, %v3162_v61   ;;  %v3341_v42 = vrot.slane %v3333_v62, %v6003_v41  ;;  %v3348_v1 = vrot.slane %v3334_v46, %v6003_v41  ;;  %v6306_v45 = vcombine.low %v1894_v9, %v1901_v23  ;;  %v1978_v32 = vrot.slane %v6240_v52, %v5983_v3 }
 0x101   : > { %v3188_v33 = vrot.slane %v3180_v20, %v6003_v41  ;;  %v3195_v28 = vrot.slane %v3181_v22, %v6003_v41  ;;  %v1950_v2 = vrot.slane %v6242_v53, %v5983_v3  ;;  %v1957_v39 = vrot.slane %v6242_v53, %v5986_v4 }
 0x102   : > { %v1964_v50 = vrot.slane %v6242_v53, %v5989_v5  ;;  %v3349_v19 = vcombine.low %v3341_v42, %v3348_v1  ;;  %v1971_v12 = vrot.slane %v6242_v53, %v5992_v6  ;;  %v3367_v43 = vcombine.low %v1922_v10, %v1929_v60 }
 0x103   : > { %v3196_v13 = vcombine.low %v3188_v33, %v3195_v28  ;;  %v3368_v27 = vcombine.low %v1936_v63, %v1943_v7  ;;  %v6324_v44 = vcombine.low %v1908_v25, %v1915_v0  ;;  %v1985_v29 = vrot.slane %v6240_v52, %v5986_v4 }
 0x104   : > { %v6312_v55 = vpop.xlane.xlu1 %904  ;;  %v6314_v11 = vpop.xlane.xlu0 %901  ;;  %4016 = vperm.xlu0 %5541, %v3349_v19   ;;  %v3214_v35 = vcombine.low %v1670_v18, %v1677_v38  ;;  %v3215_v49 = vcombine.low %v1684_v51, %v1691_v40  ;;  %v1992_v53 = vrot.slane %v6240_v52, %v5989_v5  ;;  %v1999_v54 = vrot.slane %v6240_v52, %v5992_v6 }
 0x105   : > { %3989 = vperm.xlu1 %5542, %v3196_v13   ;;  %v3375_v34 = vrot.slane %v3367_v43, %v6003_v41  ;;  %v3382_v16 = vrot.slane %v3368_v27, %v6003_v41  ;;  %v6348_v38 = vcombine.low %v1950_v2, %v1957_v39  ;;  %v2034_v36 = vrot.slane %v6278_v56, %v5983_v3 }
 0x106   : > { %v3222_v51 = vrot.slane %v3214_v35, %v6003_v41  ;;  %v3229_v40 = vrot.slane %v3215_v49, %v6003_v41  ;;  %v6354_v31 = vcombine.low %v1964_v50, %v1971_v12  ;;  %v2041_v52 = vrot.slane %v6278_v56, %v5986_v4 }
 0x107   : > { %v2048_v24 = vrot.slane %v6278_v56, %v5989_v5  ;;  %v3383_v8 = vcombine.low %v3375_v34, %v3382_v16  ;;  %v2006_v21 = vrot.slane %v6280_v59, %v5983_v3  ;;  %v2013_v10 = vrot.slane %v6280_v59, %v5986_v4 }
 0x108   : > { %v911_v17 = vpop.xlane.xlu1 %910  ;;  %v6346_v18 = vpop.xlane.xlu0 %907  ;;  %v3230_v9 = vcombine.low %v3222_v51, %v3229_v40  ;;  %v2090_v23 = vrot.slane %v6312_v55, %v5983_v3  ;;  %v2097_v15 = vrot.slane %v6312_v55, %v5986_v4  ;;  %v3401_v60 = vcombine.low %v1978_v32, %v1985_v29 }
 0x109   : > { %4022 = vperm.xlu0 %5541, %v3383_v8   ;;  %v3402_v61 = vcombine.low %v1992_v53, %v1999_v54  ;;  %v3256_v62 = vrot.slane %v6199_v57, %v6003_v41  ;;  %v2055_v7 = vrot.slane %v6278_v56, %v5992_v6  ;;  %v2020_v20 = vrot.slane %v6280_v59, %v5989_v5 }
 0x10a   : > { %v2027_v22 = vrot.slane %v6280_v59, %v5992_v6  ;;  %3995 = vperm.xlu1 %5542, %v3230_v9   ;;  %v3263_v25 = vrot.slane %v6201_v58, %v6003_v41  ;;  %v2104_v57 = vrot.slane %v6312_v55, %v5989_v5  ;;  %v2111_v0 = vrot.slane %v6312_v55, %v5992_v6 }
 0x10b   : > { %v3409_v42 = vrot.slane %v3401_v60, %v6003_v41  ;;  %v3416_v56 = vrot.slane %v3402_v61, %v6003_v41  ;;  %v6388_v1 = vcombine.low %v2006_v21, %v2013_v10  ;;  %v2146_v33 = vrot.slane %v911_v17, %v5983_v3 }
 0x10c   : > { %v6370_v46 = vpop.xlane.xlu1 %916  ;;  %v6372_v63 = vpop.xlane.xlu0 %913  ;;  %v3264_v32 = vcombine.low %v3256_v62, %v3263_v25  ;;  %v2153_v59 = vrot.slane %v911_v17, %v5986_v4  ;;  %v3469_v28 = vcombine.low %v2090_v23, %v2097_v15  ;;  %v2160_v58 = vrot.slane %v911_v17, %v5989_v5 }
 0x10d   : > { %v3417_v2 = vcombine.low %v3409_v42, %v3416_v56  ;;  %v2167_v39 = vrot.slane %v911_v17, %v5992_v6  ;;  %v2062_v19 = vrot.slane %v6314_v11, %v5983_v3  ;;  %v3435_v12 = vcombine.low %v2034_v36, %v2041_v52 }
 0x10e   : > { %4001 = vperm.xlu1 %5542, %v3264_v32   ;;  %v3436_v13 = vcombine.low %v2048_v24, %v2055_v7  ;;  %v3290_v43 = vrot.slane %v6260_v30, %v6003_v41  ;;  %v3470_v27 = vcombine.low %v2104_v57, %v2111_v0  ;;  %v2069_v29 = vrot.slane %v6314_v11, %v5986_v4 }
 0x10f   : > { %v2076_v35 = vrot.slane %v6314_v11, %v5989_v5  ;;  %4028 = vperm.xlu0 %5541, %v3417_v2   ;;  %v3297_v49 = vrot.slane %v6262_v48, %v6003_v41  ;;  %v2083_v53 = vrot.slane %v6314_v11, %v5992_v6  ;;  %v3503_v54 = vcombine.low %v2146_v33, %v2153_v59 }
 0x110   : > { %v6394_v50 = vpop.xlane.xlu0 %919  ;;  %v6396_v55 = vpop.xlane.xlu1 %922  ;;  %v3443_v34 = vrot.slane %v3435_v12, %v6003_v41  ;;  %v3450_v16 = vrot.slane %v3436_v13, %v6003_v41  ;;  %v3504_v30 = vcombine.low %v2160_v58, %v2167_v39  ;;  %v2118_v17 = vrot.slane %v6346_v18, %v5983_v3 }
 0x111   : > { %v2125_v36 = vrot.slane %v6346_v18, %v5986_v4  ;;  %v3298_v51 = vcombine.low %v3290_v43, %v3297_v49  ;;  %v2202_v11 = vrot.slane %v6370_v46, %v5983_v3  ;;  %v2209_v24 = vrot.slane %v6370_v46, %v5986_v4 }
 0x112   : > { %v3451_v48 = vcombine.low %v3443_v34, %v3450_v16  ;;  %v2216_v8 = vrot.slane %v6370_v46, %v5989_v5  ;;  %v2223_v21 = vrot.slane %v6370_v46, %v5992_v6  ;;  %v3477_v10 = vrot.slane %v3469_v28, %v6003_v41 }
 0x113   : > { %4007 = vperm.xlu1 %5542, %v3298_v51   ;;  %v3484_v9 = vrot.slane %v3470_v27, %v6003_v41  ;;  %v3324_v23 = vrot.slane %v6266_v37, %v6003_v41  ;;  %v6432_v15 = vcombine.low %v2020_v20, %v2027_v22  ;;  %v6434_v60 = vcombine.low %v2062_v19, %v2069_v29 }
 0x114   : > { %v6416_v40 = vpop.xlane.xlu0 %925  ;;  %v6418_v52 = vpop.xlane.xlu1 %928  ;;  %v6436_v61 = vcombine.low %v2076_v35, %v2083_v53  ;;  %4034 = vperm.xlu0 %5541, %v3451_v48   ;;  %v3331_v62 = vrot.slane %v6268_v14, %v6003_v41  ;;  %v2132_v46 = vrot.slane %v6346_v18, %v5989_v5  ;;  %v2139_v7 = vrot.slane %v6346_v18, %v5992_v6 }
 0x115   : > { %v3485_v25 = vcombine.low %v3477_v10, %v3484_v9  ;;  %v3511_v57 = vrot.slane %v3503_v54, %v6003_v41  ;;  %v3537_v22 = vcombine.low %v2202_v11, %v2209_v24  ;;  %v3518_v42 = vrot.slane %v3504_v30, %v6003_v41 }
 0x116   : > { %v3332_v0 = vcombine.low %v3324_v23, %v3331_v62  ;;  %v3358_v14 = vrot.slane %v6306_v45, %v6003_v41  ;;  %v6452_v56 = vcombine.low %v2118_v17, %v2125_v36  ;;  %v3538_v32 = vcombine.low %v2216_v8, %v2223_v21 }
 0x117   : > { %v2174_v18 = vrot.slane %v6372_v63, %v5983_v3  ;;  %v3365_v33 = vrot.slane %v6324_v44, %v6003_v41  ;;  %v2181_v59 = vrot.slane %v6372_v63, %v5986_v4  ;;  %v2188_v28 = vrot.slane %v6372_v63, %v5989_v5 }
 0x118   : > { %v6445_v37 = vpop.xlane.xlu0 %931  ;;  %v6447_v20 = vpop.xlane.xlu1 %934  ;;  %4040 = vperm.xlu0 %5541, %v3485_v25   ;;  %4013 = vperm.xlu1 %5542, %v3332_v0   ;;  %v3519_v2 = vcombine.low %v3511_v57, %v3518_v42  ;;  %v6463_v45 = vand.u32 127, %v1051_v26  ;;  %v2195_v58 = vrot.slane %v6372_v63, %v5992_v6  ;;  %v2230_v39 = vrot.slane %v6394_v50, %v5983_v3 }
 0x119   : > { %v2237_v44 = vrot.slane %v6394_v50, %v5986_v4  ;;  %v2244_v19 = vrot.slane %v6394_v50, %v5989_v5  ;;  %v2251_v43 = vrot.slane %v6394_v50, %v5992_v6  ;;  %v3366_v26 = vcombine.low %v3358_v14, %v3365_v33 }
 0x11a   : > { %v2258_v27 = vrot.slane %v6396_v55, %v5983_v3  ;;  %v3545_v63 = vrot.slane %v3537_v22, %v6003_v41  ;;  %v2265_v29 = vrot.slane %v6396_v55, %v5986_v4  ;;  %v3552_v35 = vrot.slane %v3538_v32, %v6003_v41 }
 0x11b   : > { %v3392_v49 = vrot.slane %v6348_v38, %v6003_v41  ;;  %v3399_v53 = vrot.slane %v6354_v31, %v6003_v41  ;;  %v2272_v50 = vrot.slane %v6396_v55, %v5989_v5  ;;  %v2279_v54 = vrot.slane %v6396_v55, %v5992_v6 }
 0x11c   : > { %v938_v12 = vpop.xlane.xlu0 %937  ;;  %v6473_v13 = vpop.xlane.xlu1 %940  ;;  %4046 = vperm.xlu0 %5541, %v3519_v2   ;;  %4019 = vperm.xlu1 %5542, %v3366_v26   ;;  %v2286_v34 = vrot.slane %v6416_v40, %v5983_v3  ;;  %v6494_v16 = vadd.s32 4294967288, %v6463_v45  ;;  %v2293_v38 = vrot.slane %v6416_v40, %v5986_v4  ;;  %v2300_v31 = vrot.slane %v6416_v40, %v5989_v5 }
 0x11d   : > { %v2307_v30 = vrot.slane %v6416_v40, %v5992_v6  ;;  %v3553_v17 = vcombine.low %v3545_v63, %v3552_v35  ;;  %v3487_v51 = vcombine.low %v2132_v46, %v2139_v7  ;;  %v6502_v48 = vcombine.low %v2174_v18, %v2181_v59 }
 0x11e   : > { %v6504_v55 = vcombine.low %v2188_v28, %v2195_v58  ;;  %v3400_v11 = vcombine.low %v3392_v49, %v3399_v53  ;;  %v6506_v24 = vcombine.low %v2230_v39, %v2237_v44  ;;  %v6508_v8 = vcombine.low %v2244_v19, %v2251_v43 }
 0x11f   : > { %v3426_v21 = vrot.slane %v6388_v1, %v6003_v41  ;;  %v3433_v10 = vrot.slane %v6432_v15, %v6003_v41  ;;  %v6514_v40 = vcombine.low %v2258_v27, %v2265_v29  ;;  %v2314_v23 = vrot.slane %v6418_v52, %v5983_v3 }
 0x120   : > { %v944_v36 = vpop.xlane.xlu0 %943  ;;  %v947_v9 = vpop.xlane.xlu1 %946  ;;  %4052 = vperm.xlu0 %5541, %v3553_v17   ;;  %4025 = vperm.xlu1 %5542, %v3400_v11   ;;  %v2321_v62 = vrot.slane %v6418_v52, %v5986_v4  ;;  %v6521_v46 = vadd.s32 4294967280, %v6463_v45  ;;  %v6523_v7 = vcombine.low %v2272_v50, %v2279_v54  ;;  %v6525_v1 = vcombine.low %v2286_v34, %v2293_v38 }
 0x121   : > { %v6527_v25 = vcombine.low %v2300_v31, %v2307_v30  ;;  %v2328_v15 = vrot.slane %v6418_v52, %v5989_v5  ;;  %v3434_v57 = vcombine.low %v3426_v21, %v3433_v10  ;;  %v2398_v22 = vrot.slane %v938_v12, %v5983_v3 }
 0x122   : > { %v2405_v0 = vrot.slane %v938_v12, %v5986_v4  ;;  %v2412_v42 = vrot.slane %v938_v12, %v5989_v5  ;;  %v2335_v32 = vrot.slane %v6418_v52, %v5992_v6  ;;  %v2419_v18 = vrot.slane %v938_v12, %v5992_v6 }
 0x123   : > { %v3460_v33 = vrot.slane %v6434_v60, %v6003_v41  ;;  %v3467_v59 = vrot.slane %v6436_v61, %v6003_v41  ;;  %v6541_v28 = vcombine.low %v2314_v23, %v2321_v62  ;;  %v2426_v2 = vrot.slane %v6473_v13, %v5983_v3 }
 0x124   : > { %v950_v14 = vpop.xlane.xlu0 %949  ;;  %4031 = vperm.xlu1 %5542, %v3434_v57   ;;  %v2433_v58 = vrot.slane %v6473_v13, %v5986_v4  ;;  %v2440_v39 = vrot.slane %v6473_v13, %v5989_v5  ;;  %v3656_v44 = vcombine.low %v2398_v22, %v2405_v0  ;;  %v3657_v19 = vcombine.low %v2412_v42, %v2419_v18  ;;  %v953_v61 = vpop.xlane.xlu1 %952 }
 0x125   : > { %v2447_v60 = vrot.slane %v6473_v13, %v5992_v6  ;;  %v2454_v12 = vrot.slane %v944_v36, %v5983_v3  ;;  %v3468_v43 = vcombine.low %v3460_v33, %v3467_v59  ;;  %v2461_v26 = vrot.slane %v944_v36, %v5986_v4 }
 0x126   : > { %v2468_v27 = vrot.slane %v944_v36, %v5989_v5  ;;  %v2475_v63 = vrot.slane %v944_v36, %v5992_v6  ;;  %v6555_v29 = vcombine.low %v2426_v2, %v2433_v58  ;;  %v3494_v35 = vrot.slane %v6452_v56, %v6003_v41 }
 0x127   : > { %v3501_v49 = vrot.slane %v3487_v51, %v6003_v41  ;;  %v2482_v53 = vrot.slane %v947_v9, %v5983_v3  ;;  %v6561_v13 = vcombine.low %v2440_v39, %v2447_v60  ;;  %v3690_v50 = vcombine.low %v2454_v12, %v2461_v26 }
 0x128   : > { %4037 = vperm.xlu1 %5542, %v3468_v43   ;;  %v2489_v54 = vrot.slane %v947_v9, %v5986_v4  ;;  %v2496_v34 = vrot.slane %v947_v9, %v5989_v5  ;;  %v956_v38 = vpop.xlane.xlu0 %955  ;;  %v3691_v31 = vcombine.low %v2468_v27, %v2475_v63  ;;  %v2503_v30 = vrot.slane %v947_v9, %v5992_v6  ;;  %v959_v57 = vpop.xlane.xlu1 %958 }
 0x129   : > { %v2510_v17 = vrot.slane %v950_v14, %v5983_v3  ;;  %v2517_v56 = vrot.slane %v950_v14, %v5986_v4  ;;  %v3502_v36 = vcombine.low %v3494_v35, %v3501_v49  ;;  %v2524_v51 = vrot.slane %v950_v14, %v5989_v5 }
 0x12a   : > { %v2531_v11 = vrot.slane %v950_v14, %v5992_v6  ;;  %v3528_v21 = vrot.slane %v6502_v48, %v6003_v41  ;;  %v6572_v10 = vcombine.low %v2482_v53, %v2489_v54  ;;  %v6574_v23 = vcombine.low %v2496_v34, %v2503_v30 }
 0x12b   : > { %v3535_v62 = vrot.slane %v6504_v55, %v6003_v41  ;;  %v3664_v9 = vrot.slane %v3656_v44, %v6003_v41  ;;  %v3724_v22 = vcombine.low %v2510_v17, %v2517_v56  ;;  %v3671_v0 = vrot.slane %v3657_v19, %v6003_v41 }
 0x12c   : > { %4043 = vperm.xlu1 %5542, %v3502_v36   ;;  %v2538_v42 = vrot.slane %v953_v61, %v5983_v3  ;;  %v2545_v14 = vrot.slane %v953_v61, %v5986_v4  ;;  %v3725_v18 = vcombine.low %v2524_v51, %v2531_v11  ;;  %v2552_v48 = vrot.slane %v953_v61, %v5989_v5  ;;  %v962_v44 = vpop.xlane.xlu0 %961  ;;  %v965_v54 = vpop.xlane.xlu1 %964 }
 0x12d   : > { %v2559_v33 = vrot.slane %v953_v61, %v5992_v6  ;;  %v2566_v59 = vrot.slane %v956_v38, %v5983_v3  ;;  %v3536_v2 = vcombine.low %v3528_v21, %v3535_v62  ;;  %v3672_v55 = vcombine.low %v3664_v9, %v3671_v0 }
 0x12e   : > { %v6585_v58 = vcombine.low %v2538_v42, %v2545_v14  ;;  %v2573_v39 = vrot.slane %v956_v38, %v5986_v4  ;;  %v2580_v19 = vrot.slane %v956_v38, %v5989_v5  ;;  %v2587_v60 = vrot.slane %v956_v38, %v5992_v6 }
 0x12f   : > { %v3562_v12 = vrot.slane %v6506_v24, %v6003_v41  ;;  %v3569_v43 = vrot.slane %v6508_v8, %v6003_v41  ;;  %4073 = vperm.xlu0 %5541, %v3672_v55   ;;  %v6594_v61 = vcombine.low %v2552_v48, %v2559_v33  ;;  %v3698_v26 = vrot.slane %v3690_v50, %v6003_v41 }
 0x130   : > { %4049 = vperm.xlu1 %5542, %v3536_v2   ;;  %v3705_v27 = vrot.slane %v3691_v31, %v6003_v41  ;;  %v6599_v63 = vadd.s32 4294967272, %v6463_v45  ;;  %v3758_v35 = vcombine.low %v2566_v59, %v2573_v39  ;;  %v2594_v53 = vrot.slane %v959_v57, %v5983_v3  ;;  %v968_v21 = vpop.xlane.xlu0 %967  ;;  %v971_v39 = vpop.xlane.xlu1 %970 }
 0x131   : > { %v3570_v49 = vcombine.low %v3562_v12, %v3569_v43  ;;  %v2601_v24 = vrot.slane %v959_v57, %v5986_v4  ;;  %v2608_v8 = vrot.slane %v959_v57, %v5989_v5  ;;  %v2615_v38 = vrot.slane %v959_v57, %v5992_v6 }
 0x132   : > { %v3706_v34 = vcombine.low %v3698_v26, %v3705_v27  ;;  %v2622_v30 = vrot.slane %v962_v44, %v5983_v3  ;;  %v3759_v50 = vcombine.low %v2580_v19, %v2587_v60  ;;  %v2629_v31 = vrot.slane %v962_v44, %v5986_v4 }
 0x133   : > { %v6606_v17 = vcombine.low %v2594_v53, %v2601_v24  ;;  %v2636_v56 = vrot.slane %v962_v44, %v5989_v5  ;;  %v2643_v36 = vrot.slane %v962_v44, %v5992_v6  ;;  %v3681_v51 = vrot.slane %v6555_v29, %v6003_v41 }
 0x134   : > { %4055 = vperm.xlu1 %5542, %v3570_v49   ;;  %4079 = vperm.xlu0 %5541, %v3706_v34   ;;  %v3688_v11 = vrot.slane %v6561_v13, %v6003_v41  ;;  %v6616_v62 = vadd.s32 4294967264, %v6463_v45  ;;  %v3776_v9 = vcombine.low %v2608_v8, %v2615_v38  ;;  %v3792_v57 = vcombine.low %v2622_v30, %v2629_v31 }
 0x135   : > { %v3732_v0 = vrot.slane %v3724_v22, %v6003_v41  ;;  %v3739_v42 = vrot.slane %v3725_v18, %v6003_v41  ;;  %v2650_v48 = vrot.slane %v965_v54, %v5983_v3  ;;  %v2657_v33 = vrot.slane %v965_v54, %v5986_v4 }
 0x136   : > { %v3689_v14 = vcombine.low %v3681_v51, %v3688_v11  ;;  %v2664_v29 = vrot.slane %v965_v54, %v5989_v5  ;;  %v2671_v13 = vrot.slane %v965_v54, %v5992_v6  ;;  %v2678_v2 = vrot.slane %v968_v21, %v5983_v3  ;;  %v974_v54 = vpop.xlane.xlu0 %973  ;;  %v977_v11 = vpop.xlane.xlu1 %976 }
 0x137   : > { %v3740_v59 = vcombine.low %v3732_v0, %v3739_v42  ;;  %v2685_v55 = vrot.slane %v968_v21, %v5986_v4  ;;  %v3793_v44 = vcombine.low %v2636_v56, %v2643_v36  ;;  %v2692_v22 = vrot.slane %v968_v21, %v5989_v5 }
 0x138   : > { %4076 = vperm.xlu1 %5542, %v3689_v14   ;;  %v2699_v18 = vrot.slane %v968_v21, %v5992_v6  ;;  %v3715_v19 = vrot.slane %v6572_v10, %v6003_v41  ;;  %v3809_v60 = vcombine.low %v2650_v48, %v2657_v33  ;;  %v3810_v12 = vcombine.low %v2664_v29, %v2671_v13 }
 0x139   : > { %4085 = vperm.xlu0 %5541, %v3740_v59   ;;  %v3722_v43 = vrot.slane %v6574_v23, %v6003_v41  ;;  %v3766_v26 = vrot.slane %v3758_v35, %v6003_v41  ;;  %v3826_v27 = vcombine.low %v2678_v2, %v2685_v55  ;;  %v3773_v49 = vrot.slane %v3759_v50, %v6003_v41 }
 0x13a   : > { %v2706_v53 = vrot.slane %v971_v39, %v5983_v3  ;;  %v2713_v24 = vrot.slane %v971_v39, %v5986_v4  ;;  %v2720_v8 = vrot.slane %v971_v39, %v5989_v5  ;;  %v2727_v10 = vrot.slane %v971_v39, %v5992_v6 }
 0x13b   : > { %v3723_v34 = vcombine.low %v3715_v19, %v3722_v43  ;;  %v3749_v38 = vrot.slane %v6585_v58, %v6003_v41  ;;  %v3827_v30 = vcombine.low %v2692_v22, %v2699_v18  ;;  %v3774_v23 = vcombine.low %v3766_v26, %v3773_v49  ;;  %v983_v49 = vpop.xlane.xlu1 %982 }
 0x13c   : > { %v3756_v35 = vrot.slane %v6594_v61, %v6003_v41  ;;  %v3800_v50 = vrot.slane %v3792_v57, %v6003_v41  ;;  %v3843_v31 = vcombine.low %v2706_v53, %v2713_v24  ;;  %v3807_v56 = vrot.slane %v3793_v44, %v6003_v41  ;;  %v980_v44 = vpop.xlane.xlu0 %979 }
 0x13d   : > { %4082 = vperm.xlu1 %5542, %v3723_v34   ;;  %v2734_v36 = vrot.slane %v974_v54, %v5983_v3  ;;  %v2741_v51 = vrot.slane %v974_v54, %v5986_v4  ;;  %4091 = vperm.xlu0 %5541, %v3774_v23   ;;  %v2748_v58 = vrot.slane %v974_v54, %v5989_v5 }
 0x13e   : > { %v3757_v21 = vcombine.low %v3749_v38, %v3756_v35  ;;  %v2755_v0 = vrot.slane %v974_v54, %v5992_v6  ;;  %v3783_v61 = vrot.slane %v6606_v17, %v6003_v41  ;;  %v3844_v42 = vcombine.low %v2720_v8, %v2727_v10 }
 0x13f   : > { %v3808_v57 = vcombine.low %v3800_v50, %v3807_v56  ;;  %v3790_v14 = vrot.slane %v3776_v9, %v6003_v41  ;;  %v3834_v48 = vrot.slane %v3826_v27, %v6003_v41  ;;  %v3860_v33 = vcombine.low %v2734_v36, %v2741_v51 }
 0x140   : > { %v3861_v29 = vcombine.low %v2748_v58, %v2755_v0  ;;  %v3841_v59 = vrot.slane %v3827_v30, %v6003_v41  ;;  %v2762_v13 = vrot.slane %v977_v11, %v5983_v3  ;;  %v2769_v55 = vrot.slane %v977_v11, %v5986_v4 }
 0x141   : > { %4088 = vperm.xlu1 %5542, %v3757_v21   ;;  %v3791_v2 = vcombine.low %v3783_v61, %v3790_v14  ;;  %v2776_v39 = vrot.slane %v977_v11, %v5989_v5  ;;  %v3817_v17 = vrot.slane %v3809_v60, %v6003_v41  ;;  %4097 = vperm.xlu0 %5541, %v3808_v57  }
 0x142   : > { %v3842_v22 = vcombine.low %v3834_v48, %v3841_v59  ;;  %v2783_v9 = vrot.slane %v977_v11, %v5992_v6  ;;  %v3824_v18 = vrot.slane %v3810_v12, %v6003_v41  ;;  %v3851_v19 = vrot.slane %v3843_v31, %v6003_v41 }
 0x143   : > { %v2342_v43 = vrot.slane %v6445_v37, %v5983_v3  ;;  %v2349_v26 = vrot.slane %v6445_v37, %v5986_v4  ;;  %v2356_v27 = vrot.slane %v6445_v37, %v5989_v5  ;;  %v3858_v60 = vrot.slane %v3844_v42, %v6003_v41 }
 0x144   : > { %v2790_v53 = vrot.slane %v980_v44, %v5983_v3  ;;  %v2797_v24 = vrot.slane %v980_v44, %v5986_v4  ;;  %v2804_v12 = vrot.slane %v980_v44, %v5989_v5  ;;  %v2811_v54 = vrot.slane %v980_v44, %v5992_v6 }
 0x145   : > { %v6677_v34 = vcombine.low %v2328_v15, %v2335_v32  ;;  %v2363_v8 = vrot.slane %v6445_v37, %v5992_v6  ;;  %4094 = vperm.xlu1 %5542, %v3791_v2   ;;  %v3877_v10 = vcombine.low %v2762_v13, %v2769_v55  ;;  %v3825_v38 = vcombine.low %v3817_v17, %v3824_v18 }
 0x146   : > { %4103 = vperm.xlu0 %5541, %v3842_v22   ;;  %v3878_v30 = vcombine.low %v2776_v39, %v2783_v9  ;;  %v3859_v23 = vcombine.low %v3851_v19, %v3858_v60  ;;  %v3868_v35 = vrot.slane %v3860_v33, %v6003_v41  ;;  %v3875_v50 = vrot.slane %v3861_v29, %v6003_v41  ;;  %v3930_v0 = vpop.permute.xlu0 %3929 }
 0x147   : > { %v6683_v31 = vcombine.low %v2342_v43, %v2349_v26  ;;  %v2370_v52 = vrot.slane %v6447_v20, %v5983_v3  ;;  %v3579_v15 = vrot.slane %v6514_v40, %v6003_v41  ;;  %v3586_v37 = vrot.slane %v6523_v7, %v6003_v41 }
 0x148   : > { %v2377_v32 = vrot.slane %v6447_v20, %v5986_v4  ;;  %v3894_v56 = vcombine.low %v2790_v53, %v2797_v24  ;;  %v3895_v36 = vcombine.low %v2804_v12, %v2811_v54  ;;  %v6695_v51 = vsub.s32 %v6463_v45, %v5980_v47 }
 0x149   : > { %4100 = vperm.xlu1 %5542, %v3825_v38   ;;  %v2818_v11 = vrot.slane %v983_v49, %v5983_v3  ;;  %v2825_v21 = vrot.slane %v983_v49, %v5986_v4  ;;  %v2832_v58 = vrot.slane %v983_v49, %v5989_v5  ;;  %v2839_v40 = vrot.slane %v983_v49, %v5992_v6  ;;  %v3933_v7 = vpop.permute.xlu1 %3932 }
 0x14a   : > { %4106 = vperm.xlu0 %5541, %v3859_v23   ;;  %v3876_v61 = vcombine.low %v3868_v35, %v3875_v50  ;;  %v3885_v42 = vrot.slane %v3877_v10, %v6003_v41  ;;  %v3892_v57 = vrot.slane %v3878_v30, %v6003_v41  ;;  %v6705_v14 = vsub.s32 %v6494_v16, %v5980_v47 }
 0x14b   : > { %v3587_v48 = vcombine.low %v3579_v15, %v3586_v37  ;;  %v3596_v3 = vrot.slane %v6525_v1, %v6003_v41  ;;  %v3603_v4 = vrot.slane %v6527_v25, %v6003_v41  ;;  %v6713_v33 = vsub.s32 %v6521_v46, %v5980_v47 }
 0x14c   : > { %v3623_v29 = vcombine.low %v2356_v27, %v2363_v8  ;;  %v2384_v59 = vrot.slane %v6447_v20, %v5989_v5  ;;  %v4125_v13 = vrot.slane %v3930_v0, %v6695_v51  ;;  %v4130_v16 = vrot.slane %v3933_v7, %v6705_v14 }
 0x14d   : > { %4058 = vperm.xlu1 %5542, %v3587_v48   ;;  %v3911_v2 = vcombine.low %v2818_v11, %v2825_v21  ;;  %v3912_v55 = vcombine.low %v2832_v58, %v2839_v40  ;;  %v3902_v1 = vrot.slane %v3894_v56, %v6003_v41  ;;  %v3909_v39 = vrot.slane %v3895_v36, %v6003_v41  ;;  %v3936_v25 = vpop.permute.xlu1 %3935 }
 0x14e   : > { %4109 = vperm.xlu0 %5541, %v3876_v61   ;;  %v3893_v17 = vcombine.low %v3885_v42, %v3892_v57  ;;  %v4132_v46 = vsel %vm4131_vm1, %v4130_v16, %v4125_v13  ;;  %v4137_v44 = vrot.slane %v3936_v25, %v6713_v33  ;;  %v6725_v5 = vsub.s32 %v6599_v63, %v5980_v47 }
 0x14f   : > { %v2391_v22 = vrot.slane %v6447_v20, %v5992_v6  ;;  %v3604_v9 = vcombine.low %v3596_v3, %v3603_v4  ;;  %v3613_v18 = vrot.slane %v6541_v28, %v6003_v41  ;;  %v3620_v19 = vrot.slane %v6677_v34, %v6003_v41 }
 0x150   : > { %v4139_v43 = vsel %vm4138_vm2, %v4137_v44, %v4132_v46  ;;  %v3639_v26 = vcombine.low %v2370_v52, %v2377_v32  ;;  %v3910_v27 = vcombine.low %v3902_v1, %v3909_v39  ;;  %v4154_v63 = vadd.s32 4294967256, %v6463_v45 }
 0x151   : > { %4061 = vperm.xlu1 %5542, %v3604_v9   ;;  %v3939_v60 = vpop.permute.xlu1 %3938  ;;  %v3919_v49 = vrot.slane %v3911_v2, %v6003_v41  ;;  %v3926_v6 = vrot.slane %v3912_v55, %v6003_v41  ;;  %v6740_v28 = vsub.s32 %v6616_v62, %v5980_v47  ;;  %v3640_v53 = vcombine.low %v2384_v59, %v2391_v22 }
 0x152   : > { %4112 = vperm.xlu0 %5541, %v3893_v17   ;;  %v4144_v20 = vrot.slane %v3939_v60, %v6725_v5  ;;  %v3621_v24 = vcombine.low %v3613_v18, %v3620_v19  ;;  %v3630_v12 = vrot.slane %v6683_v31, %v6003_v41  ;;  %v3637_v54 = vrot.slane %v3623_v29, %v6003_v41 }
 0x153   : > { %v3927_v38 = vcombine.low %v3919_v49, %v3926_v6  ;;  %v6748_v62 = vsub.s32 %v4154_v63, %v5980_v47  ;;  %v4161_v23 = vadd.s32 4294967248, %v6463_v45  ;;  %v3647_v50 = vrot.slane %v3639_v26, %v6003_v41 }
 0x154   : > { %v4146_v34 = vsel %vm4145_vm3, %v4144_v20, %v4139_v43  ;;  %v3638_v35 = vcombine.low %v3630_v12, %v3637_v54  ;;  %v3654_v31 = vrot.slane %v3640_v53, %v6003_v41  ;;  %v4168_v36 = vadd.s32 4294967240, %v6463_v45 }
 0x155   : > { %4064 = vperm.xlu1 %5542, %v3621_v24   ;;  %v3942_v8 = vpop.permute.xlu1 %3941  ;;  %v3957_v10 = vpop.permute.xlu0 %3956  ;;  %v6756_v56 = vsub.s32 %v4161_v23, %v5980_v47  ;;  %v4175_v7 = vadd.s32 4294967232, %v6463_v45  ;;  %v4182_v61 = vadd.s32 4294967224, %v6463_v45  ;;  %v4189_v29 = vadd.s32 4294967216, %v6463_v45 }
 0x156   : > { %4115 = vperm.xlu0 %5541, %v3910_v27   ;;  %v4151_v30 = vrot.slane %v3942_v8, %v6740_v28  ;;  %v3655_v11 = vcombine.low %v3647_v50, %v3654_v31  ;;  %v6762_v0 = vsub.s32 %v4168_v36, %v5980_v47  ;;  %v4196_v13 = vadd.s32 4294967208, %v6463_v45 }
 0x157   : > { %v6769_v4 = vsub.s32 %v4175_v7, %v5980_v47  ;;  %v6773_v59 = vsub.s32 %v4182_v61, %v5980_v47  ;;  %v6779_v39 = vsub.s32 %v4189_v29, %v5980_v47  ;;  %v4203_v44 = vadd.s32 4294967200, %v6463_v45 }
 0x158   : > { %v4153_v52 = vsel %vm4152_vm4, %v4151_v30, %v4146_v34  ;;  %v6783_v17 = vsub.s32 %v4196_v13, %v5980_v47  ;;  %v4210_v22 = vadd.s32 4294967192, %v6463_v45  ;;  %v4217_v6 = vadd.s32 4294967184, %v6463_v45 }
 0x159   : > { %4067 = vperm.xlu1 %5542, %v3638_v35   ;;  %v3945_v15 = vpop.permute.xlu1 %3944  ;;  %v3963_v37 = vpop.permute.xlu0 %3962  ;;  %v4186_v25 = vrot.slane %v3957_v10, %v6773_v59  ;;  %v6793_v60 = vsub.s32 %v4203_v44, %v5980_v47  ;;  %v4224_v20 = vadd.s32 4294967176, %v6463_v45 }
 0x15a   : > { %4118 = vperm.xlu0 %5541, %v3927_v38   ;;  %v4158_v32 = vrot.slane %v3945_v15, %v6748_v62  ;;  %v4200_v26 = vrot.slane %v3963_v37, %v6783_v17  ;;  %v6796_v63 = vsub.s32 %v4210_v22, %v5980_v47  ;;  %v6805_v8 = vsub.s32 %v4217_v6, %v5980_v47 }
 0x15b   : > { %v6808_v10 = vsub.s32 %v4224_v20, %v5980_v47 }
 0x15c   : > { %v4160_v21 = vsel %vm4159_vm5, %v4158_v32, %v4153_v52 }
 0x15d   : > { %4070 = vperm.xlu1 %5542, %v3655_v11   ;;  %v3948_v41 = vpop.permute.xlu1 %3947  ;;  %v3969_v58 = vpop.permute.xlu0 %3968 }
 0x15e   : > { %v4165_v40 = vrot.slane %v3948_v41, %v6756_v56  ;;  %v4214_v54 = vrot.slane %v3969_v58, %v6796_v63 }
 0x160   : > { %v4167_v42 = vsel %vm4166_vm6, %v4165_v40, %v4160_v21 }
 0x161   : > { %v3951_v57 = vpop.permute.xlu1 %3950  ;;  %v3975_v48 = vpop.permute.xlu0 %3974 }
 0x162   : > { %v4172_v3 = vrot.slane %v3951_v57, %v6762_v0  ;;  %v4228_v35 = vrot.slane %v3975_v48, %v6808_v10 }
 0x164   : > { %v4174_v16 = vsel %vm4173_vm7, %v4172_v3, %v4167_v42 }
 0x165   : > { %v3954_v2 = vpop.permute.xlu1 %3953  ;;  %v3981_v55 = vpop.permute.xlu0 %3980 }
 0x166   : > { %v4179_v1 = vrot.slane %v3954_v2, %v6769_v4  ;;  %v4238_v15 = vrot.slane %v3981_v55, %v6705_v14 }
 0x168   : > { %v4181_v46 = vsel %vm4180_vm8, %v4179_v1, %v4174_v16 }
 0x169   : > { %v3960_v9 = vpop.permute.xlu1 %3959  ;;  %v4188_v18 = vsel %vm4187_vm9, %v4186_v25, %v4181_v46  ;;  %v3987_v19 = vpop.permute.xlu0 %3986 }
 0x16a   : > { %v4193_v43 = vrot.slane %v3960_v9, %v6779_v39  ;;  %v4248_v41 = vrot.slane %v3987_v19, %v6725_v5 }
 0x16c   : > { %v4195_v27 = vsel %vm4194_vm10, %v4193_v43, %v4188_v18 }
 0x16d   : > { %v4202_v49 = vsel %vm4201_vm11, %v4200_v26, %v4195_v27  ;;  %v3993_v24 = vpop.permute.xlu0 %3992 }
 0x16e   : > { %v4258_v57 = vrot.slane %v3993_v24, %v6748_v62 }
 0x16f   : > { %v3966_v53 = vpop.permute.xlu1 %3965 }
 0x170   : > { %v4207_v12 = vrot.slane %v3966_v53, %v6793_v60 }
 0x172   : > { %v4209_v34 = vsel %vm4208_vm12, %v4207_v12, %v4202_v49 }
 0x173   : > { %v4216_v38 = vsel %vm4215_vm13, %v4214_v54, %v4209_v34  ;;  %v3999_v30 = vpop.permute.xlu0 %3998 }
 0x174   : > { %v4268_v2 = vrot.slane %v3999_v30, %v6762_v0 }
 0x175   : > { %v3972_v45 = vpop.permute.xlu1 %3971 }
 0x176   : > { %v4221_v23 = vrot.slane %v3972_v45, %v6805_v8 }
 0x177   : > { %v4005_v32 = vpop.permute.xlu0 %4004 }
 0x178   : > { %v4223_v50 = vsel %vm4222_vm14, %v4221_v23, %v4216_v38  ;;  %v4278_v22 = vrot.slane %v4005_v32, %v6773_v59 }
 0x179   : > { %v6815_v31 = vsel %vm4229_vm15, %v4228_v35, %v4223_v50 }
 0x17a   : > { %v3978_v52 = vpop.permute.xlu1 %3977 }
 0x17b   : > { %v4234_v37 = vrot.slane %v3978_v52, %v6695_v51 }
 0x17d   : > { %v4239_v36 = vsel %vm4131_vm1, %v4238_v15, %v4234_v37 }
 0x17e   : > { %v4011_v58 = vpop.permute.xlu0 %4010 }
 0x17f   : > { %v3984_v11 = vpop.permute.xlu1 %3983  ;;  %v4288_v27 = vrot.slane %v4011_v58, %v6783_v17 }
 0x180   : > { %v4243_v21 = vrot.slane %v3984_v11, %v6713_v33 }
 0x182   : > { %v4244_v40 = vsel %vm4138_vm2, %v4243_v21, %v4239_v36 }
 0x183   : > { %v4249_v7 = vsel %vm4145_vm3, %v4248_v41, %v4244_v40  ;;  %v4017_v3 = vpop.permute.xlu0 %4016 }
 0x184   : > { %v3990_v61 = vpop.permute.xlu1 %3989  ;;  %v4298_v24 = vrot.slane %v4017_v3, %v6796_v63 }
 0x185   : > { %v4253_v42 = vrot.slane %v3990_v61, %v6740_v28 }
 0x187   : > { %v4254_v48 = vsel %vm4152_vm4, %v4253_v42, %v4249_v7 }
 0x188   : > { %v4259_v29 = vsel %vm4159_vm5, %v4258_v57, %v4254_v48  ;;  %v4023_v1 = vpop.permute.xlu0 %4022 }
 0x189   : > { %v3996_v13 = vpop.permute.xlu1 %3995  ;;  %v4308_v30 = vrot.slane %v4023_v1, %v6808_v10 }
 0x18a   : > { %v4263_v16 = vrot.slane %v3996_v13, %v6756_v56 }
 0x18c   : > { %v4264_v55 = vsel %vm4166_vm6, %v4263_v16, %v4259_v29 }
 0x18d   : > { %v4002_v25 = vpop.permute.xlu1 %4001  ;;  %v4269_v46 = vsel %vm4173_vm7, %v4268_v2, %v4264_v55 }
 0x18e   : > { %v4273_v44 = vrot.slane %v4002_v25, %v6769_v4  ;;  %v4029_v43 = vpop.permute.xlu0 %4028 }
 0x190   : > { %v4274_v9 = vsel %vm4180_vm8, %v4273_v44, %v4269_v46 }
 0x191   : > { %v4279_v18 = vsel %vm4187_vm9, %v4278_v22, %v4274_v9 }
 0x192   : > { %v4008_v19 = vpop.permute.xlu1 %4007 }
 0x193   : > { %v4283_v26 = vrot.slane %v4008_v19, %v6779_v39  ;;  %v4035_v12 = vpop.permute.xlu0 %4034 }
 0x195   : > { %v4284_v49 = vsel %vm4194_vm10, %v4283_v26, %v4279_v18  ;;  %v4317_v26 = vrot.slane %v4029_v43, %v6705_v14 }
 0x196   : > { %v4289_v6 = vsel %vm4201_vm11, %v4288_v27, %v4284_v49 }
 0x197   : > { %v4014_v20 = vpop.permute.xlu1 %4013  ;;  %v4041_v35 = vpop.permute.xlu0 %4040 }
 0x198   : > { %v4293_v53 = vrot.slane %v4014_v20, %v6793_v60 }
 0x19a   : > { %v4294_v54 = vsel %vm4208_vm12, %v4293_v53, %v4289_v6 }
 0x19b   : > { %v4020_v34 = vpop.permute.xlu1 %4019  ;;  %v4299_v38 = vsel %vm4215_vm13, %v4298_v24, %v4294_v54  ;;  %v4047_v37 = vpop.permute.xlu0 %4046 }
 0x19c   : > { %v4303_v45 = vrot.slane %v4020_v34, %v6805_v8  ;;  %v4327_v34 = vrot.slane %v4035_v12, %v6725_v5 }
 0x19e   : > { %v4304_v23 = vsel %vm4222_vm14, %v4303_v45, %v4299_v38 }
 0x19f   : > { %v6848_v50 = vsel %vm4229_vm15, %v4308_v30, %v4304_v23  ;;  %v4026_v52 = vpop.permute.xlu1 %4025  ;;  %v6850_v36 = vpop.permute.xlu0 %4052 }
 0x1a0   : > { %v4313_v46 = vrot.slane %v4026_v52, %v6695_v51 }
 0x1a2   : > { %v4318_v6 = vsel %vm4131_vm1, %v4317_v26, %v4313_v46 }
 0x1a3   : > { %v4032_v15 = vpop.permute.xlu1 %4031 }
 0x1a4   : > { %v4322_v18 = vrot.slane %v4032_v15, %v6713_v33 }
 0x1a6   : > { %v4323_v24 = vsel %vm4138_vm2, %v4322_v18, %v4318_v6 }
 0x1a7   : > { %v4038_v32 = vpop.permute.xlu1 %4037  ;;  %v4328_v38 = vsel %vm4145_vm3, %v4327_v34, %v4323_v24 }
 0x1a8   : > { %v4332_v54 = vrot.slane %v4038_v32, %v6740_v28  ;;  %v4337_v32 = vrot.slane %v4041_v35, %v6748_v62 }
 0x1aa   : > { %v4333_v52 = vsel %vm4152_vm4, %v4332_v54, %v4328_v38 }
 0x1ab   : > { %v4044_v11 = vpop.permute.xlu1 %4043 }
 0x1ac   : > { %v4342_v15 = vrot.slane %v4044_v11, %v6756_v56 }
 0x1ae   : > { %v4074_v41 = vpop.permute.xlu0 %4073 }
 0x1af   : > { %v4050_v21 = vpop.permute.xlu1 %4049  ;;  %v4392_v3 = vrot.slane %v4074_v41, %v6695_v51  ;;  %v4338_v41 = vsel %vm4159_vm5, %v4337_v32, %v4333_v52 }
 0x1b3   : > { %v6852_v58 = vpop.permute.xlu1 %4055  ;;  %v4080_v40 = vpop.permute.xlu0 %4079 }
 0x1b4   : > { %v4401_v55 = vrot.slane %v4080_v40, %v6713_v33 }
 0x1b7   : > { %v4077_v7 = vpop.permute.xlu1 %4076 }
 0x1b8   : > { %v4086_v61 = vpop.permute.xlu0 %4085  ;;  %v4396_v57 = vrot.slane %v4077_v7, %v6705_v14 }
 0x1b9   : > { %v4411_v19 = vrot.slane %v4086_v61, %v6740_v28  ;;  %v4343_v61 = vsel %vm4166_vm6, %v4342_v15, %v4338_v41 }
 0x1ba   : > { %v4397_v13 = vsel %vm4131_vm1, %v4396_v57, %v4392_v3  ;;  %vm4532_vm1 = vcmask (!%p5119_p9), 1041408  }
 0x1bb   : > { %v4402_v1 = vsel %vm4138_vm2, %v4401_v55, %v4397_v13  ;;  %v4362_v13 = vrot.slane %v6852_v58, %v6779_v39  ;;  %vm5008_vm2 = vcmask (!%p5119_p9), 517120  }
 0x1bc   : > { %v4083_v42 = vpop.permute.xlu1 %4082  ;;  %v4092_v48 = vpop.permute.xlu0 %4091 }
 0x1bd   : > { %v4406_v16 = vrot.slane %v4083_v42, %v6725_v5  ;;  %v4421_v33 = vrot.slane %v4092_v48, %v6756_v56  ;;  %v4352_v42 = vrot.slane %v4050_v21, %v6769_v4  ;;  %v4347_v56 = vrot.slane %v4047_v37, %v6762_v0 }
 0x1bf   : > { %v4407_v44 = vsel %vm4145_vm3, %v4406_v16, %v4402_v1  ;;  %vm5020_vm3 = vcmask (!%p5119_p9), 1024  }
 0x1c0   : > { %v4089_v29 = vpop.permute.xlu1 %4088  ;;  %v4098_v2 = vpop.permute.xlu0 %4097  ;;  %v4412_v27 = vsel %vm4152_vm4, %v4411_v19, %v4407_v44 }
 0x1c1   : > { %v4416_v22 = vrot.slane %v4089_v29, %v6748_v62  ;;  %v4431_v28 = vrot.slane %v4098_v2, %v6769_v4  ;;  %v4348_v62 = vsel %vm4173_vm7, %v4347_v56, %v4343_v61  ;;  %v4357_v4 = vrot.slane %v6850_v36, %v6773_v59  ;;  %v4675_v61 = vld [vmem:[%s7349_s4 + $0x88] sm:$0xff] (!%p5119_p9) }
 0x1c2   : > { %v4353_v29 = vsel %vm4180_vm8, %v4352_v42, %v4348_v62  ;;  %v4658_v42 = vld [vmem:[%s7349_s4] sm:$0xff] (!%p5119_p9)  ;;  %v4659_v56 = vld [vmem:[%s7349_s4 + $0x8] sm:$0xff] (!%p5119_p9) }
 0x1c3   : > { %v4417_v20 = vsel %vm4159_vm5, %v4416_v22, %v4412_v27  ;;  %v5399_v62 = vpack.c.bf16 (!%p5119_p9), %v4659_v56, %v4658_v42  ;;  %v4665_v42 = vld [vmem:[%s7349_s4 + $0x38] sm:$0xff] (!%p5119_p9) }
 0x1c4   : > { %v4095_v25 = vpop.permute.xlu1 %4094  ;;  %v4422_v14 = vsel %vm4166_vm6, %v4421_v33, %v4417_v20 }
 0x1c5   : > { %v4104_v9 = vpop.permute.xlu0 %4103  ;;  %v4426_v51 = vrot.slane %v4095_v25, %v6762_v0  ;;  %v4358_v25 = vsel %vm4187_vm9, %v4357_v4, %v4353_v29  ;;  %v4691_v29 = vld [vmem:[%s7349_s4 + $0x108] sm:$0xff] (!%p5119_p9)  ;;  %v4677_v4 = vld [vmem:[%s7349_s4 + $0x98] sm:$0xff] (!%p5119_p9) }
 0x1c6   : > { %v4441_v57 = vrot.slane %v4104_v9, %v6779_v39  ;;  %v4363_v46 = vsel %vm4194_vm10, %v4362_v13, %v4358_v25  ;;  %v4676_v13 = vld [vmem:[%s7349_s4 + $0x90] sm:$0xff] (!%p5119_p9) }
 0x1c7   : > { %v4427_v45 = vsel %vm4173_vm7, %v4426_v51, %v4422_v14  ;;  %v4692_v25 = vld [vmem:[%s7349_s4 + $0x110] sm:$0xff] (!%p5119_p9) }
 0x1c8   : > { %v4101_v49 = vpop.permute.xlu1 %4100  ;;  %v4432_v5 = vsel %vm4180_vm8, %v4431_v28, %v4427_v45 }
 0x1c9   : > { %v4107_v53 = vpop.permute.xlu0 %4106  ;;  %v4436_v30 = vrot.slane %v4101_v49, %v6773_v59 }
 0x1ca   : > { %v4446_v35 = vrot.slane %v4107_v53, %v6783_v17 }
 0x1cb   : > { %v4437_v40 = vsel %vm4187_vm9, %v4436_v30, %v4432_v5 }
 0x1cc   : > { %v4059_v43 = vpop.permute.xlu1 %4058  ;;  %v4442_v11 = vsel %vm4194_vm10, %v4441_v57, %v4437_v40 }
 0x1cd   : > { %v4110_v23 = vpop.permute.xlu0 %4109  ;;  %v4447_v0 = vsel %vm4201_vm11, %v4446_v35, %v4442_v11  ;;  %v4367_v37 = vrot.slane %v4059_v43, %v6783_v17  ;;  %v4706_v11 = vld [vmem:[%s7349_s4 + $0x180] sm:$0xff] (!%p5119_p9) }
 0x1ce   : > { %v4451_v16 = vrot.slane %v4110_v23, %v6793_v60 }
 0x1cf   : > { %v4368_v44 = vsel %vm4201_vm11, %v4367_v37, %v4363_v46  ;;  %v4661_v37 = vld [vmem:[%s7349_s4 + $0x18] sm:$0xff] (!%p5119_p9)  ;;  %v4678_v46 = vld [vmem:[%s7349_s4 + $0xa0] sm:$0xff] (!%p5119_p9) }
 0x1d0   : > { %v4062_v12 = vpop.permute.xlu1 %4061  ;;  %v4452_v59 = vsel %vm4208_vm12, %v4451_v16, %v4447_v0  ;;  %v4660_v0 = vld [vmem:[%s7349_s4 + $0x10] sm:$0xff] (!%p5119_p9) }
 0x1d1   : > { %v4113_v7 = vpop.permute.xlu0 %4112  ;;  %v4372_v2 = vrot.slane %v4062_v12, %v6793_v60 }
 0x1d2   : > { %v4456_v21 = vrot.slane %v4113_v7, %v6796_v63  ;;  %v4674_v7 = vld [vmem:[%s7349_s4 + $0x80] sm:$0xff] (!%p5119_p9) }
 0x1d3   : > { %v4373_v22 = vsel %vm4208_vm12, %v4372_v2, %v4368_v44  ;;  %v5397_v57 = vpack.c.bf16 (!%p5119_p9), %v4675_v61, %v4674_v7  ;;  %v5403_v2 = vpack.c.bf16 (!%p5119_p9), %v4661_v37, %v4660_v0  ;;  %v4662_v44 = vld [vmem:[%s7349_s4 + $0x20] sm:$0xff] (!%p5119_p9)  ;;  %v4664_v61 = vld [vmem:[%s7349_s4 + $0x30] sm:$0xff] (!%p5119_p9)  ;;  %v4667_v0 = vld [vmem:[%s7349_s4 + $0x48] sm:$0xff] (!%p5119_p9) }
 0x1d4   : > { %v4065_v48 = vpop.permute.xlu1 %4064  ;;  %v4457_v60 = vsel %vm4215_vm13, %v4456_v21, %v4452_v59  ;;  %v5401_v21 = vpack.c.bf16 (!%p5119_p9), %v4677_v4, %v4676_v13  ;;  %v4679_v59 = vld [vmem:[%s7349_s4 + $0xa8] sm:$0xff] (!%p5119_p9)  ;;  %v5411_v56 = vpack.c.bf16 (!%p5119_p9), %v4665_v42, %v4664_v61  ;;  %v4666_v4 = vld [vmem:[%s7349_s4 + $0x40] sm:$0xff] (!%p5119_p9) }
 0x1d5   : > { %v4116_v3 = vpop.permute.xlu0 %4115  ;;  %v4377_v39 = vrot.slane %v4065_v48, %v6796_v63  ;;  %v4707_v48 = vld [vmem:[%s7349_s4 + $0x188] sm:$0xff] (!%p5119_p9)  ;;  %5398 = vmatprep.subr.bf16.mxu0 (!%p5119_p9), %v5397_v57  ;;  %v4712_v57 = vld [vmem:[%s7349_s4 + $0x1b0] sm:$0xff] (!%p5119_p9)  ;;  %v4714_v37 = vld [vmem:[%s7349_s4 + $0x1c0] sm:$0xff] (!%p5119_p9) }
 0x1d6   : > { %v4461_v55 = vrot.slane %v4116_v3, %v6805_v8  ;;  %v5429_v35 = vpack.c.bf16 (!%p5119_p9), %v4707_v48, %v4706_v11  ;;  %v4690_v3 = vld [vmem:[%s7349_s4 + $0x100] sm:$0xff] (!%p5119_p9)  ;;  %5400 = vmatpush3.bf16.msra.mxu0 (!%p5119_p9), %v5399_v62  ;;  %v4713_v11 = vld [vmem:[%s7349_s4 + $0x1b8] sm:$0xff] (!%p5119_p9)  ;;  %v4696_v48 = vld [vmem:[%s7349_s4 + $0x130] sm:$0xff] (!%p5119_p9) }
 0x1d7   : > { %v4378_v63 = vsel %vm4215_vm13, %v4377_v39, %v4373_v22  ;;  %v5431_v16 = vpack.c.bf16 (!%p5119_p9), %v4691_v29, %v4690_v3  ;;  %5402 = vmatprep.subr.bf16.mxu0 (!%p5119_p9), %v5401_v21  ;;  %v4710_v22 = vld [vmem:[%s7349_s4 + $0x1a0] sm:$0xff] (!%p5119_p9)  ;;  %v4697_v62 = vld [vmem:[%s7349_s4 + $0x138] sm:$0xff] (!%p5119_p9)  ;;  %v4683_v13 = vld [vmem:[%s7349_s4 + $0xc8] sm:$0xff] (!%p5119_p9)  ;;  %v5415_v21 = vpack.c.bf16 (!%p5119_p9), %v4667_v0, %v4666_v4  ;;  %v4586_v4 = vsub.s32 (!%p5119_p9), 0, %v5980_v47 }
 0x1d8   : > { %v4068_v1 = vpop.permute.xlu1 %4067  ;;  %v4462_v9 = vsel %vm4222_vm14, %v4461_v55, %v4457_v60  ;;  %5430 = vmatprep.subr.bf16.mxu1 (!%p5119_p9), %v5429_v35  ;;  %v4708_v55 = vld [vmem:[%s7349_s4 + $0x190] sm:$0xff] (!%p5119_p9)  ;;  %v4663_v60 = vld [vmem:[%s7349_s4 + $0x28] sm:$0xff] (!%p5119_p9)  ;;  %v5441_v35 = vpack.c.bf16 (!%p5119_p9), %v4713_v11, %v4712_v57  ;;  %v5443_v3 = vpack.c.bf16 (!%p5119_p9), %v4697_v62, %v4696_v48  ;;  %v4682_v29 = vld [vmem:[%s7349_s4 + $0xc0] sm:$0xff] (!%p5119_p9)  ;;  %v5596_v11 = vmov (!%p5119_p9), 0  }
 0x1d9   : > { %v4119_v58 = vpop.permute.xlu0 %4118  ;;  %v4382_v36 = vrot.slane %v4068_v1, %v6805_v8  ;;  %v4709_v1 = vld [vmem:[%s7349_s4 + $0x198] sm:$0xff] (!%p5119_p9)  ;;  %5432 = vmatpush3.bf16.msra.mxu1 (!%p5119_p9), %v5431_v16  ;;  %v5413_v16 = vpack.c.bf16 (!%p5119_p9), %v4683_v13, %v4682_v29  ;;  %v4738_v61 = vld [vmem:[%s7349_s4 + $0x280] sm:$0xff] (!%p5119_p9)  ;;  %v4739_v42 = vld [vmem:[%s7349_s4 + $0x288] sm:$0xff] (!%p5119_p9)  ;;  %5543 = vset.pattern.permute.xlu1 (!%p5119_p9), %v5596_v11  ;;  %v5597_v48 = vmov (!%p5119_p9), 1   ;;  %v4590_v29 = vsub.s32 (!%p5119_p9), 1, %v5980_v47 }
 0x1da   : > { %v4466_v17 = vrot.slane %v4119_v58, %v6808_v10  ;;  %v5433_v39 = vpack.c.bf16 (!%p5119_p9), %v4709_v1, %v4708_v55  ;;  %v4693_v58 = vld [vmem:[%s7349_s4 + $0x118] sm:$0xff] (!%p5119_p9)  ;;  %5404 = vmatpush3.bf16.msra.mxu0 (!%p5119_p9), %v5403_v2  ;;  %v4715_v2 = vld [vmem:[%s7349_s4 + $0x1c8] sm:$0xff] (!%p5119_p9)  ;;  %v4698_v55 = vld [vmem:[%s7349_s4 + $0x140] sm:$0xff] (!%p5119_p9)  ;;  %v5461_v57 = vpack.c.bf16 (!%p5119_p9), %v4739_v42, %v4738_v61  ;;  %5545 = vset.pattern.permute.xlu0 (!%p5119_p9), %v5597_v48  ;;  %v4594_v0 = vsub.s32 (!%p5119_p9), 2, %v5980_v47 }
 0x1db   : > { %v4383_v8 = vsel %vm4222_vm14, %v4382_v36, %v4378_v63  ;;  %v5435_v36 = vpack.c.bf16 (!%p5119_p9), %v4693_v58, %v4692_v25  ;;  %v4695_v63 = vld [vmem:[%s7349_s4 + $0x128] sm:$0xff] (!%p5119_p9)  ;;  %v5445_v25 = vpack.c.bf16 (!%p5119_p9), %v4715_v2, %v4714_v37  ;;  %v4684_v58 = vld [vmem:[%s7349_s4 + $0xd0] sm:$0xff] (!%p5119_p9)  ;;  %v7187_v13 = vld [vmem:[%s7347_s2] sm:$0x3f] (!%p5119_p9)  ;;  %v4606_v37 = vsub.s32 (!%p5119_p9), 5, %v5980_v47 }
 0x1dc   : > { %v4071_v18 = vpop.permute.xlu1 %4070  ;;  %v4467_v19 = vsel %vm4229_vm15, %v4466_v17, %v4462_v9  ;;  %v5405_v17 = vpack.c.bf16 (!%p5119_p9), %v4679_v59, %v4678_v46  ;;  %5434 = vmatprep.subr.bf16.mxu1 (!%p5119_p9), %v5433_v39  ;;  %v4711_v9 = vld [vmem:[%s7349_s4 + $0x1a8] sm:$0xff] (!%p5119_p9)  ;;  %v4685_v46 = vld [vmem:[%s7349_s4 + $0xd8] sm:$0xff] (!%p5119_p9)  ;;  %v4668_v59 = vld [vmem:[%s7349_s4 + $0x50] sm:$0xff] (!%p5119_p9)  ;;  %v4591_v2 = vrot.slane (!%p5119_p9), %v7187_v13, %v4590_v29 }
 0x1dd   : > { %v4387_v26 = vrot.slane %v4071_v18, %v6808_v10  ;;  %v4470_v49 = vsel %vm4468_vm0, %v4467_v19, %v6848_v50  ;;  %4487 = sbr.rel (%p5119_p9) target bundleno = 1247 (0x4df), region = 101  ;;  %v4694_v18 = vld [vmem:[%s7349_s4 + $0x120] sm:$0xff] (!%p5119_p9)  ;;  %v5407_v19 = vpack.c.bf16 (!%p5119_p9), %v4663_v60, %v4662_v44  ;;  %5436 = vmatpush3.bf16.msra.mxu1 (!%p5119_p9), %v5435_v36  ;;  %v4699_v1 = vld [vmem:[%s7349_s4 + $0x148] sm:$0xff] (!%p5119_p9)  ;;  %v5417_v36 = vpack.c.bf16 (!%p5119_p9), %v4685_v46, %v4684_v58  ;;  %v4716_v44 = vld [vmem:[%s7349_s4 + $0x1d0] sm:$0xff] (!%p5119_p9) }
 0x1de   : > { %5406 = vmatprep.subr.bf16.mxu0 (!%p5119_p9), %v5405_v17  ;;  %v5447_v39 = vpack.c.bf16 (!%p5119_p9), %v4699_v1, %v4698_v55  ;;  %v4669_v17 = vld [vmem:[%s7349_s4 + $0x58] sm:$0xff] (!%p5119_p9)  ;;  %v4587_v1 = vrot.slane (!%p5119_p9), %v7187_v13, %v4586_v4  ;;  %v4746_v61 = vld [vmem:[%s7349_s4 + $0x2c0] sm:$0xff] (!%p5119_p9)  ;;  %v4747_v42 = vld [vmem:[%s7349_s4 + $0x2c8] sm:$0xff] (!%p5119_p9) }
 0x1df   : > { %v4388_v27 = vsel %vm4229_vm15, %v4387_v26, %v4383_v8  ;;  %v5437_v26 = vpack.c.bf16 (!%p5119_p9), %v4711_v9, %v4710_v22  ;;  %v5439_v8 = vpack.c.bf16 (!%p5119_p9), %v4695_v63, %v4694_v18  ;;  %5408 = vmatpush3.bf16.msra.mxu0 (!%p5119_p9), %v5407_v19  ;;  %v4717_v60 = vld [vmem:[%s7349_s4 + $0x1d8] sm:$0xff] (!%p5119_p9)  ;;  %v5419_v22 = vpack.c.bf16 (!%p5119_p9), %v4669_v17, %v4668_v59  ;;  %v4700_v18 = vld [vmem:[%s7349_s4 + $0x150] sm:$0xff] (!%p5119_p9)  ;;  %v4686_v19 = vld [vmem:[%s7349_s4 + $0xe0] sm:$0xff] (!%p5119_p9) }
 0x1e0   : > { %v4469_v6 = vsel %vm4468_vm0, %v4388_v27, %v6815_v31  ;;  %v5449_v9 = vpack.c.bf16 (!%p5119_p9), %v4717_v60, %v4716_v44  ;;  %v4701_v63 = vld [vmem:[%s7349_s4 + $0x158] sm:$0xff] (!%p5119_p9)  ;;  %v4730_v11 = vld [vmem:[%s7349_s4 + $0x240] sm:$0xff] (!%p5119_p9) }
 0x1e1   : > { %v4471_v20 = vcombine.low %v4469_v6, %v4470_v49  ;;  %5438 = vmatprep.subr.bf16.mxu1 (!%p5119_p9), %v5437_v26  ;;  %v5451_v26 = vpack.c.bf16 (!%p5119_p9), %v4701_v63, %v4700_v18  ;;  %v4722_v18 = vld [vmem:[%s7349_s4 + $0x200] sm:$0xff] (!%p5119_p9)  ;;  %v4723_v63 = vld [vmem:[%s7349_s4 + $0x208] sm:$0xff] (!%p5119_p9) }
 0x1e2   : > { %5440 = vmatpush3.bf16.msra.mxu1 (!%p5119_p9), %v5439_v8  ;;  %v4687_v8 = vld [vmem:[%s7349_s4 + $0xe8] sm:$0xff] (!%p5119_p9) }
 0x1e3   : > { %5118 = vst.sshfl [vmem:[%s4482_s30] sm:$0x33 pattern:$0x76325410] %v4471_v20  ;;  %5442 = vmatprep.subr.bf16.mxu1 (!%p5119_p9), %v5441_v35 }
 0x1e6   : > { %5444 = vmatpush3.bf16.msra.mxu1 %v5443_v3 }
 0x1e7   : > { %5446 = vmatprep.subr.bf16.mxu1 %v5445_v25  ;;  %v4595_v25 = vrot.slane %v7187_v13, %v4594_v0 }
 0x1ea   : > { %v5120_v51 = vld.sshfl [vmem:[#allocation2] sm:$0x33 pattern:$0x76325410]  ;;  %5448 = vmatpush3.bf16.msra.mxu1 %v5447_v39  ;;  %v4607_v39 = vrot.slane %v7187_v13, %v4606_v37 }
 0x1eb   : > { %v5121_v53 = vld.sshfl [vmem:[#allocation2 + $0x4] sm:$0x33 pattern:$0x76325410]  ;;  %v4501_v24 = vcombine.high %v5120_v51, %v5120_v51  ;;  %v6922_v54 = vmul.f32 0.020408163, %v5120_v51  ;;  %5450 = vmatprep.subr.bf16.mxu1 %v5449_v9 }
 0x1ec   : > { %v5122_v10 = vld.sshfl [vmem:[#allocation2 + $0x8] sm:$0x33 pattern:$0x76325410]  ;;  %v4512_v33 = vcombine.high %v5121_v53, %v5121_v53  ;;  %v6924_v34 = vmul.f32 0.020408163, %v5121_v53 }
 0x1ed   : > { %v4523_v14 = vcombine.high %v5122_v10, %v5122_v10  ;;  %v6926_v50 = vmul.f32 0.020408163, %v4501_v24  ;;  %v4533_v31 = vsel %vm4532_vm1, %v6922_v54, 0.0  ;;  %v6932_v38 = vmul.f32 0.020408163, %v5122_v10 }
 0x1ee   : > { %v6930_v43 = vmul.f32 0.020408163, %v4512_v33  ;;  %v4536_v30 = vsel %vm4532_vm1, %v6924_v34, 0.0  ;;  %5452 = vmatpush3.bf16.msra.mxu1 %v5451_v26 }
 0x1ef   : > { %v4534_v45 = vsel %vm4532_vm1, %v6926_v50, 0.0  ;;  %v6938_v52 = vmul.f32 0.020408163, %v4523_v14  ;;  %v4540_v32 = vsel %vm4532_vm1, %v6932_v38, 0.0 }
 0x1f0   : > { %v4535_v23 = vadd.f32 %v4534_v45, %v4533_v31  ;;  %v4538_v15 = vsel %vm4532_vm1, %v6930_v43, 0.0 }
 0x1f1   : > { %v4542_v12 = vsel %vm4532_vm1, %v6938_v52, 0.0 }
 0x1f2   : > { %v4537_v28 = vadd.f32 %v4536_v30, %v4535_v23 }
 0x1f4   : > { %v4539_v5 = vadd.f32 %v4538_v15, %v4537_v28 }
 0x1f6   : > { %v4541_v41 = vadd.f32 %v4540_v32, %v4539_v5 }
 0x1f8   : > { %v4543_v40 = vadd.f32 %v4542_v12, %v4541_v41  ;;  %v4680_v41 = vld [vmem:[%s7349_s4 + $0xb0] sm:$0xff] }
 0x1fa   : > { %4544 = vadd.xlane.f32.xlu0 %v4543_v40  ;;  %v4681_v40 = vld [vmem:[%s7349_s4 + $0xb8] sm:$0xff] }
 0x1fb   : > { %v5409_v7 = vpack.c.bf16 %v4681_v40, %v4680_v41  ;;  %v4705_v41 = vld [vmem:[%s7349_s4 + $0x178] sm:$0xff] }
 0x1fd   : > { %5410 = vmatprep.subr.bf16.mxu0 %v5409_v7 }
 0x1fe   : > { %5412 = vmatpush3.bf16.msra.mxu0 %v5411_v56  ;;  %v4754_v56 = vld [vmem:[%s7346_s1] sm:$0x3] }
 0x1ff   : > { %5414 = vmatprep.subr.bf16.mxu0 %v5413_v16  ;;  %4758 = vperm.xlu1 %5543, %v4754_v56   ;;  %v4598_v16 = vsub.s32 3, %v5980_v47 }
 0x201   : > { %v4599_v55 = vrot.slane %v7187_v13, %v4598_v16 }
 0x202   : > { %5416 = vmatpush3.bf16.msra.mxu0 %v5415_v21  ;;  %v7196_v21 = vld [vmem:[%s7348_s3] sm:$0x3f] }
 0x203   : > { %5418 = vmatprep.subr.bf16.mxu0 %v5417_v36  ;;  %5544 = vset.pattern.permute.xlu1 %v5597_v48  ;;  %v4629_v46 = vrot.slane %v7196_v21, %v4590_v29  ;;  %v4637_v59 = vrot.slane %v7196_v21, %v4598_v16  ;;  %v4625_v36 = vrot.slane %v7196_v21, %v4586_v4  ;;  %v4731_v48 = vld [vmem:[%s7349_s4 + $0x248] sm:$0xff]  ;;  %v4732_v16 = vld [vmem:[%s7349_s4 + $0x250] sm:$0xff]  ;;  %v4733_v4 = vld [vmem:[%s7349_s4 + $0x258] sm:$0xff] }
 0x204   : > { %4978 = vperm.xlu1 %5544, %v4754_v56   ;;  %v4633_v17 = vrot.slane %v7196_v21, %v4594_v0  ;;  %v5477_v56 = vpack.c.bf16 %v4747_v42, %v4746_v61  ;;  %v4750_v0 = vld [vmem:[%s7349_s4 + $0x2e0] sm:$0xff] }
 0x206   : > { %5420 = vmatpush3.bf16.msra.mxu0 %v5419_v22 }
 0x287   : > { %v4545_v27 = vpop.xlane.xlu0 %4544 }
 0x288   : > { %v4547_v49 = vmul.f32 0.0013020834, %v4545_v27  ;;  %v4670_v27 = vld [vmem:[%s7349_s4 + $0x60] sm:$0xff] }
 0x28a   : > { %v7019_v6 = vsub.f32 %v6922_v54, %v4547_v49  ;;  %v7022_v20 = vsub.f32 %v6926_v50, %v4547_v49  ;;  %v7025_v51 = vsub.f32 %v6924_v34, %v4547_v49  ;;  %v7028_v53 = vsub.f32 %v6930_v43, %v4547_v49 }
 0x28b   : > { %v7031_v24 = vsub.f32 %v6932_v38, %v4547_v49  ;;  %v7040_v14 = vsub.f32 %v6938_v52, %v4547_v49  ;;  %v4671_v49 = vld [vmem:[%s7349_s4 + $0x68] sm:$0xff] }
 0x28c   : > { %v4554_v10 = vmul.f32 %v7019_v6, %v7019_v6  ;;  %v4555_v33 = vmul.f32 %v7022_v20, %v7022_v20  ;;  %v4556_v54 = vmul.f32 %v7025_v51, %v7025_v51  ;;  %v4557_v34 = vmul.f32 %v7028_v53, %v7028_v53 }
 0x28d   : > { %v4558_v38 = vmul.f32 %v7031_v24, %v7031_v24  ;;  %v4559_v23 = vmul.f32 %v7040_v14, %v7040_v14 }
 0x28e   : > { %v4560_v50 = vsel %vm4532_vm1, %v4554_v10, 0.0  ;;  %v4561_v31 = vsel %vm4532_vm1, %v4555_v33, 0.0  ;;  %v4563_v45 = vsel %vm4532_vm1, %v4556_v54, 0.0  ;;  %v4565_v52 = vsel %vm4532_vm1, %v4557_v34, 0.0  ;;  %v4718_v33 = vld [vmem:[%s7349_s4 + $0x1e0] sm:$0xff]  ;;  %v4719_v54 = vld [vmem:[%s7349_s4 + $0x1e8] sm:$0xff] }
 0x28f   : > { %v4562_v43 = vadd.f32 %v4561_v31, %v4560_v50  ;;  %v4567_v28 = vsel %vm4532_vm1, %v4558_v38, 0.0  ;;  %v4569_v5 = vsel %vm4532_vm1, %v4559_v23, 0.0  ;;  %v5421_v10 = vpack.c.bf16 %v4687_v8, %v4686_v19  ;;  %v4702_v34 = vld [vmem:[%s7349_s4 + $0x160] sm:$0xff]  ;;  %v4688_v38 = vld [vmem:[%s7349_s4 + $0xf0] sm:$0xff] }
 0x290   : > { %v5423_v50 = vpack.c.bf16 %v4671_v49, %v4670_v27  ;;  %v5453_v31 = vpack.c.bf16 %v4719_v54, %v4718_v33  ;;  %v4672_v23 = vld [vmem:[%s7349_s4 + $0x70] sm:$0xff]  ;;  %v4645_v19 = vrot.slane %v7196_v21, %v4606_v37  ;;  %v4741_v27 = vld [vmem:[%s7349_s4 + $0x298] sm:$0xff]  ;;  %v5463_v49 = vpack.c.bf16 %v4723_v63, %v4722_v18  ;;  %v4751_v37 = vld [vmem:[%s7349_s4 + $0x2e8] sm:$0xff] }
 0x291   : > { %v4564_v30 = vadd.f32 %v4563_v45, %v4562_v43  ;;  %v4703_v43 = vld [vmem:[%s7349_s4 + $0x168] sm:$0xff]  ;;  %v4689_v45 = vld [vmem:[%s7349_s4 + $0xf8] sm:$0xff]  ;;  %5422 = vmatprep.subr.bf16.mxu0 %v5421_v10 }
 0x292   : > { %5454 = vmatprep.subr.bf16.mxu1 %v5453_v31  ;;  %5424 = vmatpush3.bf16.msra.mxu0 %v5423_v50  ;;  %v4724_v31 = vld [vmem:[%s7349_s4 + $0x210] sm:$0xff] }
 0x293   : > { %v4566_v15 = vadd.f32 %v4565_v52, %v4564_v30  ;;  %v5425_v30 = vpack.c.bf16 %v4689_v45, %v4688_v38  ;;  %v4673_v52 = vld [vmem:[%s7349_s4 + $0x78] sm:$0xff]  ;;  %v4742_v45 = vld [vmem:[%s7349_s4 + $0x2a0] sm:$0xff] }
 0x294   : > { %v5427_v40 = vpack.c.bf16 %v4673_v52, %v4672_v23 }
 0x295   : > { %v4568_v32 = vadd.f32 %v4567_v28, %v4566_v15  ;;  %v4720_v15 = vld [vmem:[%s7349_s4 + $0x1f0] sm:$0xff]  ;;  %v5455_v28 = vpack.c.bf16 %v4703_v43, %v4702_v34  ;;  %5426 = vmatprep.subr.bf16.mxu0 %v5425_v30  ;;  %v4725_v43 = vld [vmem:[%s7349_s4 + $0x218] sm:$0xff]  ;;  %v4743_v30 = vld [vmem:[%s7349_s4 + $0x2a8] sm:$0xff] }
 0x296   : > { %5428 = vmatpush3.bf16.msra.mxu0 %v5427_v40  ;;  %v5467_v23 = vpack.c.bf16 %v4725_v43, %v4724_v31  ;;  %v5469_v52 = vpack.c.bf16 %v4743_v30, %v4742_v45  ;;  %v4728_v40 = vld [vmem:[%s7349_s4 + $0x230] sm:$0xff]  ;;  %v5125_v31 = vld [vmem:[%s7351_s6] ss:$0 sm:$0xff] }
 0x297   : > { %v4570_v12 = vadd.f32 %v4569_v5, %v4568_v32  ;;  %v4721_v32 = vld [vmem:[%s7349_s4 + $0x1f8] sm:$0xff]  ;;  %5456 = vmatpush3.bf16.msra.mxu1 %v5455_v28  ;;  %5462 = vmatprep.subr.bf16.mxu0 %v5461_v57  ;;  %v4727_v28 = vld [vmem:[%s7349_s4 + $0x228] sm:$0xff] }
 0x298   : > { %v5457_v5 = vpack.c.bf16 %v4721_v32, %v4720_v15  ;;  %v4726_v15 = vld [vmem:[%s7349_s4 + $0x220] sm:$0xff]  ;;  %v4744_v32 = vld [vmem:[%s7349_s4 + $0x2b0] sm:$0xff] }
 0x299   : > { %4571 = vadd.xlane.f32.xlu0 %v4570_v12  ;;  %v4704_v12 = vld [vmem:[%s7349_s4 + $0x170] sm:$0xff] }
 0x29a   : > { %v5459_v7 = vpack.c.bf16 %v4705_v41, %v4704_v12  ;;  %5458 = vmatprep.subr.bf16.mxu1 %v5457_v5  ;;  %v4745_v5 = vld [vmem:[%s7349_s4 + $0x2b8] sm:$0xff]  ;;  %v5471_v12 = vpack.c.bf16 %v4727_v28, %v4726_v15  ;;  %v5126_v15 = vld [vmem:[%s7352_s7] ss:$0 sm:$0xff] }
 0x29b   : > { %v5473_v41 = vpack.c.bf16 %v4745_v5, %v4744_v32 }
 0x29c   : > { %5460 = vmatpush3.bf16.msra.mxu1 %v5459_v7  ;;  %v4729_v7 = vld [vmem:[%s7349_s4 + $0x238] sm:$0xff] }
 0x29d   : > { %v5475_v57 = vpack.c.bf16 %v4729_v7, %v4728_v40 }
 0x326   : > { %v4572_v62 = vpop.xlane.xlu0 %4571 }
 0x327   : > { %v4573_v35 = vmul.f32 0.0013020834, %v4572_v62  ;;  %v4748_v62 = vld [vmem:[%s7349_s4 + $0x2d0] sm:$0xff] }
 0x329   : > { %v4574_v3 = vadd.f32 1e-12, %v4573_v35  ;;  %v4749_v35 = vld [vmem:[%s7349_s4 + $0x2d8] sm:$0xff] }
 0x32a   : > { %v5481_v29 = vpack.c.bf16 %v4749_v35, %v4748_v62 }
 0x32b   : > { %5546 = vrsqrt.f32 %v4574_v3  ;;  %v5479_v3 = vpack.c.bf16 %v4731_v48, %v4730_v11 }
 0x335   : > { %v7203_v58 = vpop.eup %5546 }
 0x336   : > { %v4577_v44 = vmul.f32 %v7203_v58, %v7022_v20  ;;  %v4579_v60 = vmul.f32 %v7203_v58, %v7028_v53  ;;  %v4576_v22 = vmul.f32 %v7203_v58, %v7019_v6  ;;  %v4578_v9 = vmul.f32 %v7203_v58, %v7025_v51  ;;  %v4740_v51 = vld [vmem:[%s7349_s4 + $0x290] sm:$0xff] }
 0x337   : > { %v4581_v20 = vmul.f32 %v7203_v58, %v7040_v14  ;;  %v5465_v50 = vpack.c.bf16 %v4741_v27, %v4740_v51 }
 0x338   : > { %v4615_v53 = vmul.f32 %v4591_v2, %v4577_v44  ;;  %v4617_v26 = vmul.f32 %v4599_v55, %v4579_v60  ;;  %v4614_v8 = vmul.f32 %v4587_v1, %v4576_v22  ;;  %v4616_v6 = vmul.f32 %v4595_v25, %v4578_v9  ;;  %v4734_v1 = vld [vmem:[%s7349_s4 + $0x260] sm:$0xff]  ;;  %v4735_v25 = vld [vmem:[%s7349_s4 + $0x268] sm:$0xff]  ;;  %v4736_v44 = vld [vmem:[%s7349_s4 + $0x270] sm:$0xff] }
 0x339   : > { %v4619_v10 = vmul.f32 %v4607_v39, %v4581_v20  ;;  %v5483_v2 = vpack.c.bf16 %v4733_v4, %v4732_v16  ;;  %v5485_v55 = vpack.c.bf16 %v4751_v37, %v4750_v0  ;;  %v4602_v39 = vsub.s32 4, %v5980_v47  ;;  %v4737_v47 = vld [vmem:[%s7349_s4 + $0x278] sm:$0xff] }
 0x33a   : > { %v4653_v33 = vadd.f32 %v4629_v46, %v4615_v53  ;;  %v4655_v54 = vadd.f32 %v4637_v59, %v4617_v26  ;;  %v4652_v34 = vadd.f32 %v4625_v36, %v4614_v8  ;;  %v4654_v14 = vadd.f32 %v4633_v17, %v4616_v6  ;;  %v4752_v46 = vld [vmem:[%s7349_s4 + $0x2f0] sm:$0xff]  ;;  %v4753_v59 = vld [vmem:[%s7349_s4 + $0x2f8] sm:$0xff]  ;;  %v4759_v53 = vpop.permute.xlu1 %4758 }
 0x33b   : > { %v4657_v38 = vadd.f32 %v4645_v19, %v4619_v10  ;;  %v5487_v36 = vpack.c.bf16 %v4735_v25, %v4734_v1  ;;  %v5489_v17 = vpack.c.bf16 %v4753_v59, %v4752_v46  ;;  %v4580_v60 = vmul.f32 %v7203_v58, %v7031_v24  ;;  %v5123_v19 = vld [vmem:[%s7350_s5] ss:$0 sm:$0xff] }
 0x33c   : > { %4830 = vmatprep.mubr.f32.mxu0 %v4653_v33  ;;  %4900 = vmatprep.mubr.f32.mxu1 %v4655_v54  ;;  %v4603_v22 = vrot.slane %v7187_v13, %v4602_v39  ;;  %v5491_v9 = vpack.c.bf16 %v4737_v47, %v4736_v44  ;;  %v4641_v63 = vrot.slane %v7196_v21, %v4602_v39  ;;  %v5124_v21 = vld [vmem:[%s7350_s5 + $0x1] ss:$0 sm:$0xff] }
 0x33d   : > { %4831 = vmatmul.mubr.f32.vlgmr.msra.gmra.mrb[0].mxu0 %v4652_v34  ;;  %4901 = vmatmul.mubr.f32.vlgmr.msra.gmra.mrb[0].mxu1 %v4654_v14  ;;  %v4765_v6 = vmul.f32 %v5123_v19, %v4759_v53 }
 0x33e   : > { %5464 = vmatpush3.bf16.msra.mxu0 %v5463_v49  ;;  %4970 = vmatprep.mubr.f32.mxu0 %v4657_v38  ;;  %v4618_v18 = vmul.f32 %v4603_v22, %v4580_v60  ;;  %v4979_v10 = vpop.permute.xlu1 %4978 }
 0x33f   : > { %5466 = vmatprep.subr.bf16.mxu0 %v5465_v50  ;;  %v4985_v14 = vmul.f32 %v5124_v21, %v4979_v10 }
 0x340   : > { %v4656_v20 = vadd.f32 %v4641_v63, %v4618_v18 }
 0x342   : > { %5468 = vmatpush3.bf16.msra.mxu0 %v5467_v23 }
 0x343   : > { %5470 = vmatprep.subr.bf16.mxu0 %v5469_v52 }
 0x346   : > { %5472 = vmatpush3.bf16.msra.mxu0 %v5471_v12  ;;  %v5127_v12 = vld [vmem:[#allocation3] ss:$0 sm:$0xff] }
 0x347   : > { %5474 = vmatprep.subr.bf16.mxu0 %v5473_v41 }
 0x34a   : > { %5476 = vmatpush3.bf16.msra.mxu0 %v5475_v57 }
 0x34b   : > { %5478 = vmatprep.subr.bf16.mxu0 %v5477_v56 }
 0x34e   : > { %5480 = vmatpush3.bf16.msra.mxu0 %v5479_v3 }
 0x34f   : > { %5482 = vmatprep.subr.bf16.mxu0 %v5481_v29 }
 0x352   : > { %5484 = vmatpush3.bf16.msra.mxu0 %v5483_v2 }
 0x353   : > { %5486 = vmatprep.subr.bf16.mxu0 %v5485_v55 }
 0x356   : > { %5488 = vmatpush3.bf16.msra.mxu0 %v5487_v36 }
 0x357   : > { %5490 = vmatprep.subr.bf16.mxu0 %v5489_v17 }
 0x35a   : > { %5492 = vmatpush3.bf16.msra.mxu0 %v5491_v9 }
 0x35d   : > { %4971 = vmatmul.mubr.f32.vlgmr.msra.gmra.mrb[2].mxu0 %v4656_v20 }
 0x410   : > { %v5324_v26 = vpop.f32.mrb[0].mxu0  ;;  %v5359_v8 = vpop.f32.mrb[0].mxu1 }
 0x411   : > { %v5325_v24 = vpop.f32.mrb[1].mxu0  ;;  %v5360_v58 = vpop.f32.mrb[1].mxu1 }
 0x412   : > { %v5326_v13 = vadd.f32 %v5325_v24, %v5324_v26  ;;  %v5361_v51 = vadd.f32 %v5360_v58, %v5359_v8 }
 0x414   : > { %v4833_v27 = vadd.f32 %v5326_v13, %v4765_v6 }
 0x416   : > { %v4903_v49 = vadd.f32 %v5361_v51, %v4833_v27 }
 0x430   : > { %v5394_v33 = vpop.f32.mrb[2].mxu0 }
 0x431   : > { %v5395_v54 = vpop.f32.mrb[3].mxu0 }
 0x432   : > { %v5396_v34 = vadd.f32 %v5395_v54, %v5394_v33 }
 0x434   : > { %v4973_v50 = vadd.f32 %v5396_v34, %v4903_v49 }
 0x436   : > { %v4986_v43 = vadd.f32 %v4985_v14, %v4973_v50 }
 0x438   : > { %v4994_v38 = vadd.f32 %v5125_v31, %v4986_v43 }
 0x43a   : > { %v4996_v45 = vmul.f32 0.70710677, %v4994_v38  ;;  %v4995_v23 = vmul.f32 0.5, %v4994_v38 }
 0x43c   : > { %5548 = verf.f32 %v4996_v45 }
 0x446   : > { %v5549_v30 = vpop.eup %5548 }
 0x447   : > { %v4998_v52 = vadd.f32 1.0, %v5549_v30 }
 0x449   : > { %v4999_v28 = vmul.f32 %v4998_v52, %v4995_v23 }
 0x44b   : > { %v5007_v32 = vmul.f32 %v5126_v15, %v4999_v28 }
 0x44d   : > { %v5009_v5 = vsel %vm5008_vm2, %v5007_v32, 0.0 }
 0x44e   : > { %5010 = vadd.xlane.f32.xlu0 %v5009_v5 }
 0x4db   : > { %v5011_v41 = vpop.xlane.xlu0 %5010 }
 0x4dc   : > { %v5019_v40 = vadd.f32 %v5127_v12, %v5011_v41 }
 0x4de   : > { %5021 = vst.msk [vmem:[%s7354_s9] sm:$0x3] %vm5020_vm3, %v5019_v40 }
 0x4df PF: > { %s21_s15 = sadd.s32 1, %s5588_s15   ;;  %s7355_s11 = smov %s5576_s12 }
 0x4e0   : > { %p18_p10 = scmp.ge.s32.totalorder %s21_s15, 5   ;;  %s7356_s12 = smov %s5686_s18 }
 0x4e1   : > { %s7357_s13 = smov %s5584_s14  ;;  %s7358_s14 = smov %s7360_s8 }
 0x4e2   :  { %20 = sbr.rel (!%p18_p10) target bundleno = 6 (0x6), region = 142 }

</bundles_post_ra>
